<compile_context>
chip_gen: v6e
topology: v6e:2x2x1
jax: 0.10.0
libtpu: 0.0.40
codegen_flags: <defaults>
</compile_context>

<pallas_src>
import functools

import jax
import jax.numpy as jnp
from jax.experimental import pallas as pl
from jax.experimental.pallas import tpu as pltpu


def _round_up(x, m):
    return ((x + m - 1) // m) * m


def _sage_en_kernel(feat_ref, adj_ref, w_self_ref, w_neigh_ref, out_ref,
                    acc_ref, self_feat_ref, *, deg_col):
    i = pl.program_id(0)          # output row-tile
    k = pl.program_id(1)          # contraction (neighbor) tile

    @pl.when(k == 0)
    def _init():
        acc_ref[...] = jnp.zeros_like(acc_ref)

    feat_blk = feat_ref[...]      # (tk, f_in_p) bf16; column `deg_col` is all ones
    adj_blk = adj_ref[...]        # (tm, tk)     bf16

    # One bf16 MXU pass yields both the neighbor aggregation (cols < f_in) and the
    # row degree (col == deg_col), accumulated in f32.
    acc_ref[...] += jnp.dot(adj_blk, feat_blk,
                            preferred_element_type=jnp.float32)

    # tm == tk, so the k == i feature block is exactly this row tile's own
    # features; stash it instead of streaming `features` a second time.
    @pl.when(k == i)
    def _stash_self():
        self_feat_ref[...] = feat_blk

    @pl.when(k == pl.num_programs(1) - 1)
    def _finalize():
        acc = acc_ref[...]
        deg = acc[:, deg_col:deg_col + 1]                       # (tm, 1), exact f32
        neigh = acc * pl.reciprocal(deg + 1.0, approx=True)     # EUP slot, ~free
        # concat([feat, neigh]) @ W.T == feat @ W_self + neigh @ W_neigh
        out = jnp.dot(self_feat_ref[...].astype(jnp.float32), w_self_ref[...],
                      preferred_element_type=jnp.float32)
        out += jnp.dot(neigh, w_neigh_ref[...],
                       preferred_element_type=jnp.float32)
        out_ref[...] = jnp.maximum(out, 0.0).astype(out_ref.dtype)   # ReLU (Sage_En)


def sage_en_forward(features, adj, weight, *, tile=256):
    """Eval-mode Sage_En.forward for a dense 2-D adjacency.

    features: [N, F_in] float32, adj: [N, N] dense 0/1, weight: [F_out, 2*F_in]
    (PyTorch nn.Linear layout, bias=False). Returns [N, F_out] float32.
    """
    N, f_in = features.shape
    f_out = weight.shape[0]
    assert weight.shape == (f_out, 2 * f_in)
    assert adj.shape == (N, N)

    # Lane/sublane-friendly padded sizes (+1 on F_in reserves the degree column).
    f_in_p = _round_up(f_in + 1, 128)
    f_out_p = _round_up(f_out, 128)
    tm = tk = min(tile, _round_up(N, 128))   # square tiles: k == i block == self tile
    n_p = _round_up(N, tm)

    # Pad + cast. bf16 is exact for a 0/1 adjacency; degrees are recovered from
    # the f32 MXU accumulator so normalization stays exact.
    feat_p = jnp.zeros((n_p, f_in_p), jnp.bfloat16)
    feat_p = feat_p.at[:N, :f_in].set(features.astype(jnp.bfloat16))
    feat_p = feat_p.at[:, f_in].set(jnp.bfloat16(1.0))          # degree column
    adj_p = jnp.zeros((n_p, n_p), jnp.bfloat16)
    adj_p = adj_p.at[:N, :N].set(adj.astype(jnp.bfloat16))

    # Split W.T into self / neighbor halves; zero-padded rows (incl. the degree
    # column row) contribute nothing.
    w_t = weight.T.astype(jnp.float32)                          # (2*F_in, F_out)
    w_self = jnp.zeros((f_in_p, f_out_p), jnp.float32).at[:f_in, :f_out].set(w_t[:f_in])
    w_neigh = jnp.zeros((f_in_p, f_out_p), jnp.float32).at[:f_in, :f_out].set(w_t[f_in:])

    grid = (n_p // tm, n_p // tk)
    out_p = pl.pallas_call(
        functools.partial(_sage_en_kernel, deg_col=f_in),
        out_shape=jax.ShapeDtypeStruct((n_p, f_out_p), jnp.float32),
        grid_spec=pltpu.PrefetchScalarGridSpec(
            num_scalar_prefetch=0,
            grid=grid,
            in_specs=[
                pl.BlockSpec((tk, f_in_p), lambda i, k: (k, 0)),      # streamed features
                pl.BlockSpec((tm, tk), lambda i, k: (i, k)),          # adjacency tile
                pl.BlockSpec((f_in_p, f_out_p), lambda i, k: (0, 0)), # W_self (resident)
                pl.BlockSpec((f_in_p, f_out_p), lambda i, k: (0, 0)), # W_neigh (resident)
            ],
            out_specs=pl.BlockSpec((tm, f_out_p), lambda i, k: (i, 0)),
            scratch_shapes=[
                pltpu.VMEM((tm, f_in_p), jnp.float32),    # neigh + degree accumulator
                pltpu.VMEM((tm, f_in_p), jnp.bfloat16),   # self-feature tile
            ],
        ),
        compiler_params=pltpu.CompilerParams(
            dimension_semantics=("parallel", "arbitrary")),
    )(feat_p, adj_p, w_self, w_neigh)

    # TODO(synk): F.dropout is identity in eval mode; training-mode dropout not implemented.
    return out_p[:N, :f_out]


def sage_en_ref(features, adj, weight):
    neigh = (adj @ features) / (jnp.sum(adj, axis=1, keepdims=True) + 1.0)
    data = jnp.concatenate([features, neigh], axis=-1)
    return jax.nn.relu(data @ weight.T)


if __name__ == "__main__":
    # Small, deterministic example (non-multiple-of-tile N exercises padding,
    # grid is (2, 2) so both the k-blocking and the k == i self-tile path run).
    N, F_IN, F_OUT = 300, 16, 32

    key = jax.random.PRNGKey(0)
    k_feat, k_adj, k_w = jax.random.split(key, 3)

    features = jax.random.normal(k_feat, (N, F_IN), dtype=jnp.float32)
    # Symmetric 0/1 adjacency with no self loops.
    a = (jax.random.uniform(k_adj, (N, N)) < 0.1).astype(jnp.float32)
    adj = jnp.triu(a, k=1)
    adj = adj + adj.T
    # nn.init.normal_ on the Linear weight of shape [F_OUT, 2*F_IN].
    weight = jax.random.normal(k_w, (F_OUT, 2 * F_IN), dtype=jnp.float32)

    out = sage_en_forward(features, adj, weight)
    out = jax.block_until_ready(out)
    assert out.shape == (N, F_OUT)

    ref = sage_en_ref(features, adj, weight)
    abs_err = float(jnp.max(jnp.abs(out - ref)))
    rel_err = float(jnp.linalg.norm(out - ref) / (jnp.linalg.norm(ref) + 1e-12))
    assert abs_err < 0.3, f"max abs err {abs_err}"
    assert rel_err < 0.05, f"rel err {rel_err}"

    print("KERNEL_OK")
</pallas_src>

<mosaic_0001>
module attributes {stable_mosaic.version = 11 : i64} {
  func.func @_sage_en_kernel(%arg0: i32, %arg1: i32, %arg2: memref<256x128xbf16, #tpu.memory_space<vmem>>, %arg3: memref<256x256xbf16, #tpu.memory_space<vmem>>, %arg4: memref<128x128xf32, #tpu.memory_space<vmem>>, %arg5: memref<128x128xf32, #tpu.memory_space<vmem>>, %arg6: memref<256x128xf32, #tpu.memory_space<vmem>>, %arg7: memref<256x128xf32, #tpu.memory_space<vmem>>, %arg8: memref<256x128xbf16, #tpu.memory_space<vmem>>) attributes {dimension_semantics = [#tpu.dimension_semantics<parallel>, #tpu.dimension_semantics<arbitrary>], iteration_bounds = array<i64: 2, 2>, scalar_prefetch = 0 : i64, scratch_operands = 2 : i64, tpu.core_type = #tpu.core_type<tc>, window_params = [{transform_indices = @transform_0, window_bounds = array<i64: 256, 128>}, {transform_indices = @transform_1, window_bounds = array<i64: 256, 256>}, {pipeline_mode = #tpu.pipeline_mode<synchronous>, transform_indices = @transform_2, window_bounds = array<i64: 128, 128>}, {pipeline_mode = #tpu.pipeline_mode<synchronous>, transform_indices = @transform_3, window_bounds = array<i64: 128, 128>}, {transform_indices = @transform_4, window_bounds = array<i64: 256, 128>}]} {
    %c0_i32 = arith.constant 0 : i32
    %0 = arith.cmpi eq, %arg1, %c0_i32 : i32
    %1 = arith.extui %0 : i1 to i32
    %c0_i32_0 = arith.constant 0 : i32
    %2 = arith.cmpi ne, %1, %c0_i32_0 : i32
    scf.if %2 {
      %cst_10 = arith.constant 0.000000e+00 : f32
      %15 = vector.broadcast %cst_10 : f32 to vector<256x128xf32>
      %c0_11 = arith.constant 0 : index
      %c0_12 = arith.constant 0 : index
      %16 = vector.load %arg7[%c0_11, %c0_12] : memref<256x128xf32, #tpu.memory_space<vmem>>, vector<256x128xf32>
      tpu.vector_store %arg7[%c0_11, %c0_12], %15 {strides = array<i32>} : memref<256x128xf32, #tpu.memory_space<vmem>>, vector<256x128xf32>,
    } else {
    }
    %c0 = arith.constant 0 : index
    %c0_1 = arith.constant 0 : index
    %3 = vector.load %arg2[%c0, %c0_1] : memref<256x128xbf16, #tpu.memory_space<vmem>>, vector<256x128xbf16>
    %c0_2 = arith.constant 0 : index
    %c0_3 = arith.constant 0 : index
    %4 = vector.load %arg3[%c0_2, %c0_3] : memref<256x256xbf16, #tpu.memory_space<vmem>>, vector<256x256xbf16>
    %c0_4 = arith.constant 0 : index
    %c0_5 = arith.constant 0 : index
    %5 = vector.load %arg7[%c0_4, %c0_5] : memref<256x128xf32, #tpu.memory_space<vmem>>, vector<256x128xf32>
    %cst = arith.constant dense<0.000000e+00> : vector<256x128xf32>
    %6 = tpu.matmul %4, %3, %cst {dimension_numbers = #tpu.dot_dimension_numbers<[1], [0], [0], [1], [0, 0, 1, 1], [], []>} : vector<256x256xbf16>, vector<256x128xbf16>, vector<256x128xf32> -> vector<256x128xf32>
    %7 = arith.addf %5, %6 : vector<256x128xf32>
    %c0_6 = arith.constant 0 : index
    %c0_7 = arith.constant 0 : index
    %8 = vector.load %arg7[%c0_6, %c0_7] : memref<256x128xf32, #tpu.memory_space<vmem>>, vector<256x128xf32>
    tpu.vector_store %arg7[%c0_6, %c0_7], %7 {strides = array<i32>} : memref<256x128xf32, #tpu.memory_space<vmem>>, vector<256x128xf32>,
    %9 = arith.cmpi eq, %arg1, %arg0 : i32
    %10 = arith.extui %9 : i1 to i32
    %c0_i32_8 = arith.constant 0 : i32
    %11 = arith.cmpi ne, %10, %c0_i32_8 : i32
    scf.if %11 {
      %c0_10 = arith.constant 0 : index
      %c0_11 = arith.constant 0 : index
      %15 = vector.load %arg8[%c0_10, %c0_11] : memref<256x128xbf16, #tpu.memory_space<vmem>>, vector<256x128xbf16>
      tpu.vector_store %arg8[%c0_10, %c0_11], %3 {strides = array<i32>} : memref<256x128xbf16, #tpu.memory_space<vmem>>, vector<256x128xbf16>,
    } else {
    }
    %c1_i32 = arith.constant 1 : i32
    %12 = arith.cmpi eq, %arg1, %c1_i32 : i32
    %13 = arith.extui %12 : i1 to i32
    %c0_i32_9 = arith.constant 0 : i32
    %14 = arith.cmpi ne, %13, %c0_i32_9 : i32
    scf.if %14 {
      %c0_10 = arith.constant 0 : index
      %c0_11 = arith.constant 0 : index
      %15 = vector.load %arg7[%c0_10, %c0_11] : memref<256x128xf32, #tpu.memory_space<vmem>>, vector<256x128xf32>
      %16 = vector.extract_strided_slice %15 {offsets = [0, 16], sizes = [256, 1], strides = [1, 1]} : vector<256x128xf32> to vector<256x1xf32>
      %cst_12 = arith.constant 1.000000e+00 : f32
      %17 = vector.broadcast %cst_12 : f32 to vector<256x1xf32>
      %18 = arith.addf %16, %17 : vector<256x1xf32>
      %19 = tpu.reciprocal %18 {approx = true} : vector<256x1xf32> -> vector<256x1xf32>
      %20 = vector.broadcast %19 : vector<256x1xf32> to vector<256x128xf32>
      %21 = arith.mulf %15, %20 : vector<256x128xf32>
      %c0_13 = arith.constant 0 : index
      %c0_14 = arith.constant 0 : index
      %22 = vector.load %arg8[%c0_13, %c0_14] : memref<256x128xbf16, #tpu.memory_space<vmem>>, vector<256x128xbf16>
      %23 = arith.extf %22 : vector<256x128xbf16> to vector<256x128xf32>
      %c0_15 = arith.constant 0 : index
      %c0_16 = arith.constant 0 : index
      %24 = vector.load %arg4[%c0_15, %c0_16] : memref<128x128xf32, #tpu.memory_space<vmem>>, vector<128x128xf32>
      %cst_17 = arith.constant dense<0.000000e+00> : vector<256x128xf32>
      %25 = tpu.matmul %23, %24, %cst_17 {dimension_numbers = #tpu.dot_dimension_numbers<[1], [0], [0], [1], [0, 0, 1, 1], [], []>} : vector<256x128xf32>, vector<128x128xf32>, vector<256x128xf32> -> vector<256x128xf32>
      %c0_18 = arith.constant 0 : index
      %c0_19 = arith.constant 0 : index
      %26 = vector.load %arg5[%c0_18, %c0_19] : memref<128x128xf32, #tpu.memory_space<vmem>>, vector<128x128xf32>
      %cst_20 = arith.constant dense<0.000000e+00> : vector<256x128xf32>
      %27 = tpu.matmul %21, %26, %cst_20 {dimension_numbers = #tpu.dot_dimension_numbers<[1], [0], [0], [1], [0, 0, 1, 1], [], []>} : vector<256x128xf32>, vector<128x128xf32>, vector<256x128xf32> -> vector<256x128xf32>
      %28 = arith.addf %25, %27 : vector<256x128xf32>
      %cst_21 = arith.constant 0.000000e+00 : f32
      %29 = vector.broadcast %cst_21 : f32 to vector<256x128xf32>
      %30 = arith.maximumf %28, %29 : vector<256x128xf32>
      %c0_22 = arith.constant 0 : index
      %c0_23 = arith.constant 0 : index
      %31 = vector.load %arg6[%c0_22, %c0_23] : memref<256x128xf32, #tpu.memory_space<vmem>>, vector<256x128xf32>
      tpu.vector_store %arg6[%c0_22, %c0_23], %30 {strides = array<i32>} : memref<256x128xf32, #tpu.memory_space<vmem>>, vector<256x128xf32>,
    } else {
    }
    return
  }
  func.func @transform_0(%arg0: i32, %arg1: i32) -> (i32, i32) {
    %c0_i32 = arith.constant 0 : i32
    %c0_i32_0 = arith.constant 0 : i32
    return %arg1, %c0_i32 : i32, i32
  }
  func.func @transform_1(%arg0: i32, %arg1: i32) -> (i32, i32) {
    %c0_i32 = arith.constant 0 : i32
    return %arg0, %arg1 : i32, i32
  }
  func.func @transform_2(%arg0: i32, %arg1: i32) -> (i32, i32) {
    %c0_i32 = arith.constant 0 : i32
    %c0_i32_0 = arith.constant 0 : i32
    %c0_i32_1 = arith.constant 0 : i32
    return %c0_i32, %c0_i32_0 : i32, i32
  }
  func.func @transform_3(%arg0: i32, %arg1: i32) -> (i32, i32) {
    %c0_i32 = arith.constant 0 : i32
    %c0_i32_0 = arith.constant 0 : i32
    %c0_i32_1 = arith.constant 0 : i32
    return %c0_i32, %c0_i32_0 : i32, i32
  }
  func.func @transform_4(%arg0: i32, %arg1: i32) -> (i32, i32) {
    %c0_i32 = arith.constant 0 : i32
    %c0_i32_0 = arith.constant 0 : i32
    return %arg0, %c0_i32 : i32, i32
  }
}

</mosaic_0001>

<bundles_post_ra>
// kernel: tpu_custom_call.1
= control target key start
LH: loop header
LB: loop body
LE: loop exit
PB: predicated region body
PF: predicated region fallthrough
CT: control target
= control target key end

     0   :  { %s3839_s0 = inlined_call_operand.hbm [shape: bf16[512,128], index: 0, kind: input, shape index: {}]   ;;  %s3840_s1 = inlined_call_operand.hbm [shape: bf16[512,512], index: 1, kind: input, shape index: {}]   ;;  %s3841_s2 = inlined_call_operand.hbm [shape: f32[128,128], index: 2, kind: input, shape index: {}]   ;;  %s3842_s3 = inlined_call_operand.hbm [shape: f32[128,128], index: 3, kind: input, shape index: {}]   ;;  %s3843_s4 = inlined_call_operand.hbm [shape: f32[512,128], index: 4, kind: output, shape index: {}]  }
   0x1   :  { %3858 = sst [smem:[#allocation30_spill]] %s3839_s0 }
   0x2   :  { %3859 = sst [smem:[#allocation31_spill]] %s3841_s2 }
   0x3   :  { %3860 = sst [smem:[#allocation32_spill]] %s3842_s3 }
   0x4   :  { %3861 = sst [smem:[#allocation33_spill]] %s3843_s4 }
   0x5   :  { %9 = vsyncpa [#allocation5], 0 }
   0x6   :  { %11 = vsyncpa [#allocation5 + $0x1], 0 }
   0x7   :  { %12 = vsyncpa [#allocation8], 0 }
   0x8   :  { %14 = vsyncpa [#allocation8 + $0x1], 0 }
   0x9   :  { %15 = vsyncpa [#allocation11], 0 }
   0xa   :  { %16 = vsyncpa [#allocation6], 0 }
   0xb   :  { %18 = vsyncpa [#allocation6 + $0x1], 0  ;;  %s3139_s15 = smov 0   ;;  %s3141_s16 = smov 0  }
   0xc   :  { %s3143_s17 = smov 0   ;;  %s3145_s18 = smov 0  }
   0xd   :  { %s3147_s19 = smov 0   ;;  %s3149_s20 = smov 0  }
   0xe   :  { %s3151_s21 = smov 0   ;;  %s3153_s22 = smov 0  }
   0xf   :  { %s3155_s23 = smov 0   ;;  %s3157_s24 = smov 0  }
  0x10   :  { %s3159_s25 = smov 0   ;;  %s3161_s26 = smov 0  }
  0x11   :  { %s3163_s27 = smov 0   ;;  %s3165_s28 = smov 0  }
  0x12 LB: > { %3862 = sst [smem:[#allocation18_spill]] %s3046_s15  ;;  %s3206_s29 = sadd.s32 4294967295, %s3098_s28   ;;  %s3098_s28 = sphi %s3165_s28, %s24_s28   ;;  %s3094_s27 = sphi %s3163_s27, %s3926_s27   ;;  %s3090_s26 = sphi %s3161_s26, %s3925_s26   ;;  %s3086_s25 = sphi %s3159_s25, %s3924_s25   ;;  %s3082_s24 = sphi %s3157_s24, %s3923_s24   ;;  %s3078_s23 = sphi %s3155_s23, %s3913_s23   ;;  %s3074_s22 = sphi %s3153_s22, %s3922_s22   ;;  %s3070_s21 = sphi %s3151_s21, %s3921_s21   ;;  %s3066_s20 = sphi %s3149_s20, %s3920_s20   ;;  %s3062_s19 = sphi %s3147_s19, %s3919_s19   ;;  %s3058_s18 = sphi %s3145_s18, %s3918_s18   ;;  %s3054_s17 = sphi %s3143_s17, %s3917_s17   ;;  %s3050_s16 = sphi %s3141_s16, %s3916_s16   ;;  %s3046_s15 = sphi %s3139_s15, %s3909_s15  }
  0x13   : > { %3863 = sst [smem:[#allocation19_spill]] %s3050_s16  ;;  %s2002_s30 = sadd.s32 4294967294, %s3098_s28  }
  0x14   : > { %3864 = sst [smem:[#allocation20_spill]] %s3078_s23  ;;  %p56_p0 = scmp.ne.s32.totalorder %s3074_s22, %s3070_s21 }
  0x15   : > { %3865 = sst [smem:[#allocation21_spill]] %s3082_s24  ;;  %p3855_p1 = scmp.eq.s32.totalorder %s3206_s29, 0 }
  0x16   : > { %3866 = sst [smem:[#allocation22_spill]] %s3086_s25  ;;  %p84_p3 = scmp.ne.s32.totalorder %s3062_s19, %s3058_s18 }
  0x17   : > { %p3216_p4 = por %p3855_p1, %p56_p0  ;;  %p149_p6 = scmp.ne.s32.totalorder %s3054_s17, %s3050_s16 }
  0x18   : > { %p3223_p5 = por %p84_p3, %p3855_p1  ;;  %p150_p7 = scmp.eq.s32.totalorder %s3206_s29, 3 }
  0x19   : > { %p155_p8 = scmp.ne.s32.totalorder %s3050_s16, %s3046_s15  ;;  %p156_p9 = scmp.eq.s32.totalorder %s2002_s30, 3 }
  0x1a   : > { %p2003_p10 = scmp.ge.s32.totalorder %s3098_s28, 1  ;;  %p3233_p11 = por %p150_p7, %p149_p6 }
  0x1b   : > { %p163_p12 = scmp.lt.s32.totalorder %s3098_s28, 5  ;;  %p3238_p13 = por %p156_p9, %p155_p8 }
  0x1c   : > { %s3869_s8 = scalar_select %p3233_p11, 1, 0 }
  0x1d   : > { %s3871_s9 = scalar_select %p3238_p13, 1, 0 }
  0x1e   : > { %3870 = sst [smem:[#allocation23_spill]] %s3869_s8  ;;  %p3242_p0 = pnand %p2003_p10, %p163_p12 }
  0x1f   : > { %3872 = sst [smem:[#allocation24_spill]] %s3871_s9  ;;  %s3100_s11 = smov [#allocation9]  }
  0x20   : > { %s175_s12 = sshll.u32 %s3100_s11, 4  ;;  %p2557_p3 = pneg %p3242_p0  ;;  %s176_s12 = int_to_ptr.vmem [resolvable:$true] %s175_s12 }
  0x21   : > { %s3101_s14 = smov [#allocation10]   ;;  %s2845_s21 = scalar_lea.vmem %s176_s12, 2048 }
  0x22   : > { %p3250_p6 = pnand %p2557_p3, %p3855_p1  ;;  %s188_s18 = sshll.u32 %s3101_s14, 4  ;;  %s189_s18 = int_to_ptr.vmem [resolvable:$true] %s188_s18 }
  0x23   : > { %p2846_p8 = scmp.ne.s32.totalorder %s176_s12, %s2845_s21  ;;  %p2853_p12 = scmp.lt.s32.totalorder %s176_s12, %s176_s12 }
  0x24   : > { %p2836_p7 = pneg %p3250_p6  ;;  %p2854_p2 = scmp.lt.s32.totalorder %s2845_s21, %s2845_s21 }
  0x26   : > { %p2848_p9 = pnand %p2846_p8, %p2836_p7  ;;  %p2855_p13 = por %p2854_p2, %p2853_p12 }
  0x28   : > { %p2849_p10 = pneg %p2848_p9 }
  0x2a   : > { %p2856_p3 = pnand %p2855_p13, %p2849_p10 }
  0x2c   : > { %2859 = shalt.err (!%p2856_p3)
}
  0x2d   : > { %s3846_s30 = smov 128   ;;  %s3847_s11 = smov 8  }
  0x2e   : > { %s3875_s2 = sld [smem:[#allocation31_spill]]  ;;  %s2871_s9 = scalar_lea.vmem %s189_s18, 2048 }
  0x2f   : > { %p2872_p8 = scmp.ne.s32.totalorder %s189_s18, %s2871_s9  ;;  %p2879_p13 = scmp.lt.s32.totalorder %s189_s18, %s189_s18 }
  0x30   : > { %p2880_p10 = scmp.lt.s32.totalorder %s2871_s9, %s2871_s9 }
  0x31   : > { %p2874_p9 = pnand %p2872_p8, %p2836_p7 }
  0x32   : > { %p2881_p12 = por %p2880_p10, %p2879_p13 }
  0x33   : > { %p2875_p2 = pneg %p2874_p9 }
  0x34   : > { %2560 = dma.hbm_to_vmem [thread:$0]  (!%p3250_p6), %s3875_s2, 2048, %s176_s12, [#allocation8], %s3846_s30, %s3846_s30, %s3847_s11  }
  0x35   : > { %p2882_p3 = pnand %p2881_p12, %p2875_p2 }
  0x37   : > { %2885 = shalt.err (!%p2882_p3)
}
  0x38   : > { %s3876_s3 = sld [smem:[#allocation32_spill]]  ;;  %s33_s6 = sadd.s32 1, %s3090_s26 }
  0x39   : > { %p34_p7 = scmp.ge.s32.totalorder %s33_s6, 2  ;;  %s36_s9 = sadd.s32 1, %s3094_s27 }
  0x3a   : > { %s43_s12 = sadd.s32 1, %s3078_s23  ;;  %p50_p8 = scmp.ne.s32.totalorder %s3078_s23, %s3074_s22 }
  0x3b   : > { %s3928_s6 = smov (%p34_p7, %s33_s6), 0  ;;  %s3930_s9 = smov (!%p34_p7, %s36_s9), %s3094_s27 }
  0x3c   : > { %3877 = sst [smem:[#allocation25_spill]] %s3928_s6  ;;  %s40_s15 = ssub.s32 %s3090_s26, %s3928_s6 }
  0x3d   : > { %p51_p9 = scmp.eq.s32.totalorder %s3098_s28, 0  ;;  %p41_p2 = scmp.eq.s32.totalorder %s40_s15, 0 }
  0x3e   : > { %2563 = dma.hbm_to_vmem [thread:$0]  (!%p3250_p6), %s3876_s3, 2048, %s189_s18, [#allocation11], %s3846_s30, %s3846_s30, %s3847_s11  }
  0x3f   : > { %p38_p6 = scmp.ge.s32.totalorder %s3930_s9, 2  ;;  %p3289_p13 = por %p51_p9, %p50_p8 }
  0x40   : > { %s71_s18 = sadd.s32 1, %s3066_s20  ;;  %p3881_p10 = scmp.ne.s32.totalorder %s3066_s20, %s3062_s19 }
  0x41   : > { %s3932_s9 = smov (%p38_p6, %s3930_s9), 0  ;;  %p2577_p8 = scmp.lt.s32.totalorder %s3098_s28, 4 }
  0x42   : > { %3879 = sst [smem:[#allocation26_spill]] %s3932_s9  ;;  %s66_s21 = ssub.s32 %s3094_s27, %s3932_s9 }
  0x43   : > { %s3297_s14 = scalar_select %p41_p2, %s3078_s23, %s43_s12  }
  0x44   : > { %p3304_p12 = por %p3881_p10, %p51_p9  ;;  %s68_s11 = sor.u32 %s66_s21, %s40_s15 }
  0x45   : > { %3880 = sst [smem:[#allocation27_spill]] %s3297_s14  ;;  %p137_p3 = scmp.eq.s32.totalorder %s66_s21, 0 }
  0x46   : > { %p69_p7 = scmp.eq.s32.totalorder %s68_s11, 0  ;;  %s3883_s2 = sadd.s32 1, %s3054_s17 }
  0x47   : > { %s3312_s3 = scalar_select %p137_p3, %s3054_s17, %s3883_s2  }
  0x48   : > { %s3315_s6 = scalar_select %p69_p7, %s3066_s20, %s71_s18  }
  0x49   : > { %3884 = sst [smem:[#allocation28_spill]] %s3312_s3  ;;  %s202_s4 = sand.u32 1, %s3078_s23  }
  0x4a   : > { %3885 = sst [smem:[#allocation29_spill]] %s3315_s6  ;;  %s2077_s8 = sshll.u32 %s3090_s26, 11 }
  0x4b   : > { %s2007_s25 = sshll.u32 %s202_s4, 7  ;;  %s3886_s0 = sld [smem:[#allocation30_spill]] }
  0x4c   : > { %s206_s24 = scalar_lea.vmem [#allocation4], %s2007_s25  ;;  %p3326_p9 = pnand %p2577_p8, %p3289_p13 }
  0x4d   : > { %s213_s16 = sshll.u32 %s206_s24, 4  ;;  %s203_s2 = scalar_lea.sflag [#allocation5], %s202_s4  ;;  %s214_s16 = int_to_ptr.vmem [resolvable:$true] %s213_s16 }
  0x4e   : > { %p2888_p6 = pneg %p3326_p9  ;;  %s2899_s11 = scalar_lea.vmem %s214_s16, 2048 }
  0x4f   : > { %p2900_p2 = scmp.ne.s32.totalorder %s214_s16, %s2899_s11  ;;  %s3104_s18 = smov [#allocation4]  }
  0x50   : > { %s2904_s14 = sshll.u32 %s3104_s18, 4  ;;  %s2905_s14 = int_to_ptr.vmem [resolvable:$false] %s2904_s14 }
  0x51   : > { %s212_s9 = scalar_lea.hbm %s3886_s0, %s2077_s8  ;;  %p2902_p10 = pnand %p2900_p2, %p2888_p6 }
  0x52   : > { %s2906_s25 = scalar_lea.vmem %s2905_s14, 4096  ;;  %p2907_p7 = scmp.lt.s32.totalorder %s214_s16, %s2905_s14 }
  0x53   : > { %p2903_p3 = pneg %p2902_p10  ;;  %p2908_p1 = scmp.lt.s32.totalorder %s2906_s25, %s2899_s11 }
  0x55   : > { %p2909_p11 = por %p2908_p1, %p2907_p7 }
  0x57   : > { %p2910_p13 = pnand %p2909_p11, %p2903_p3 }
  0x59   : > { %2913 = shalt.err (!%p2910_p13)
}
  0x5a   : > { %s3105_s24 = smov 64   ;;  %s3106_s4 = smov 4  }
  0x5b   : > { %2567 = dma.hbm_to_vmem [thread:$0]  (!%p3326_p9), %s212_s9, 2048, %s214_s16, %s203_s2, %s3105_s24, %s3105_s24, %s3106_s4  }
  0x5c   : > { %s2012_s8 = sshll.u32 %s3090_s26, 1  ;;  %p3339_p6 = pnand %p2577_p8, %p3304_p12 }
  0x5d   : > { %s223_s21 = sand.u32 1, %s3098_s28   ;;  %s225_s12 = sand.u32 1, %s3066_s20  }
  0x5e   : > { %s2010_s11 = sshll.u32 %s225_s12, 8  ;;  %s2078_s18 = sshll.u32 %s3094_s27, 7 }
  0x5f   : > { %s234_s14 = sadd.s32 %s2078_s18, %s2012_s8  ;;  %s227_s0 = scalar_lea.vmem [#allocation7], %s2010_s11 }
  0x60   : > { %s2014_s25 = sshll.u32 %s234_s14, 6  ;;  %s237_s23 = sshll.u32 %s227_s0, 4  ;;  %s238_s23 = int_to_ptr.vmem [resolvable:$true] %s237_s23 }
  0x61   : > { %s236_s16 = scalar_lea.hbm %s3840_s1, %s2014_s25  ;;  %s224_s30 = scalar_lea.sflag [#allocation8], %s223_s21 }
  0x62   : > { %p2916_p1 = pneg %p3339_p6  ;;  %s2927_s9 = scalar_lea.vmem %s238_s23, 4096 }
  0x63   : > { %p2928_p11 = scmp.ne.s32.totalorder %s238_s23, %s2927_s9  ;;  %s3107_s15 = smov [#allocation7]  }
  0x64   : > { %s2932_s2 = sshll.u32 %s3107_s15, 4  ;;  %s2933_s2 = int_to_ptr.vmem [resolvable:$false] %s2932_s2 }
  0x65   : > { %p2930_p12 = pnand %p2928_p11, %p2916_p1  ;;  %s2934_s24 = scalar_lea.vmem %s2933_s2, 8192 }
  0x66   : > { %p2935_p9 = scmp.lt.s32.totalorder %s238_s23, %s2933_s2  ;;  %p2936_p2 = scmp.lt.s32.totalorder %s2934_s24, %s2927_s9 }
  0x67   : > { %p2931_p8 = pneg %p2930_p12 }
  0x68   : > { %p2937_p10 = por %p2936_p2, %p2935_p9 }
  0x6a   : > { %p2938_p3 = pnand %p2937_p10, %p2931_p8 }
  0x6c   : > { %2941 = shalt.err (!%p2938_p3)
}
  0x6d   : > { %s3108_s0 = smov 256   ;;  %s3889_s3 = smov 8  }
  0x6e   : > { %s3890_s6 = smov 128   ;;  %249 = sbr.rel (%p3242_p0) target bundleno = 917 (0x395), region = 36 }
  0x6f   : > { %2570 = dma.hbm_to_vmem [thread:$0]  (!%p3339_p6), %s236_s16, 4096, %s238_s23, %s224_s30, %s3108_s0, %s3890_s6, %s3889_s3  }
  0x70   : > { %s251_s4 = sand.u32 (!%p3242_p0), 1, %s3074_s22  }
  0x71   : > { %s2016_s8 = sshll.u32 (!%p3242_p0), %s251_s4, 7  ;;  %s252_s21 = scalar_lea.sflag (!%p3242_p0), [#allocation5], %s251_s4 }
  0x72   : > { %s3358_s12 = scalar_lea.vmem (!%p3242_p0), [#allocation4], %s2016_s8 }
  0x73   : > { %3025 = dma.done.wait (%p3216_p4), %s252_s21, 2048  }
  0x74   : > { %3027 = vsyncadd (%p3216_p4), %s252_s21, 4294965248  ;;  %s260_s13 = sand.u32 1, %s3206_s29   ;;  %s262_s23 = sand.u32 1, %s3062_s19  }
  0x75   : > { %s2017_s11 = sshll.u32 %s262_s23, 8  ;;  %s261_s10 = scalar_lea.sflag [#allocation8], %s260_s13 }
  0x76   : > { %s3366_s18 = scalar_lea.vmem [#allocation7], %s2017_s11 }
  0x77   : > { %3029 = dma.done.wait (%p3223_p5), %s261_s10, 4096  }
  0x78   : > { %3031 = vsyncadd (%p3223_p5), %s261_s10, 4294963200  ;;  %p3891_p0 = scmp.eq.s32.totalorder %s3206_s29, 0 }
  0x7a   : > { %3033 = dma.done.wait (%p3891_p0), [#allocation8], 2048   ;;  %p3892_p7 = pmov %p3891_p0 }
  0x7b   : > { %p3893_p4 = pmov %p3891_p0 }
  0x7c   : > { %3035 = vsyncadd (%p3892_p7), [#allocation8], 4294965248 }
  0x7d   : > { %3037 = dma.done.wait (%p3893_p4), [#allocation11], 2048   ;;  %p3894_p13 = pmov %p3891_p0 }
  0x7e   : > { %s3895_s5 = sld [smem:[#allocation19_spill]] }
  0x7f   : > { %3039 = vsyncadd (%p3894_p13), [#allocation11], 4294965248  ;;  %s3896_s7 = sld [smem:[#allocation21_spill]] }
  0x84   : > { %s299_s14 = sand.u32 1, %s3895_s5  }
  0x85   : > { %s2020_s25 = sshll.u32 %s299_s14, 8  ;;  %p2021_p5 = scmp.ne.s32.totalorder %s3896_s7, 0 }
  0x86   : > { %s3383_s16 = scalar_lea.vmem [#allocation12], %s2020_s25 }
  0x87   : > { %310 = sbr.rel (%p2021_p5) target bundleno = 157 (0x9d), region = 56 }
  0x8c   : > { %v3109_v0 = vmov 0.0  }
  0x8d   : > { %311 = vst [vmem:[#allocation2 + $0xb0] sm:$0xff] %v3109_v0  ;;  %312 = vst [vmem:[#allocation2] sm:$0xff] %v3109_v0 }
  0x8e   : > { %313 = vst [vmem:[#allocation2 + $0xd8] sm:$0xff] %v3109_v0  ;;  %314 = vst [vmem:[#allocation2 + $0x18] sm:$0xff] %v3109_v0 }
  0x8f   : > { %315 = vst [vmem:[#allocation2 + $0x50] sm:$0xff] %v3109_v0  ;;  %316 = vst [vmem:[#allocation2 + $0x68] sm:$0xff] %v3109_v0 }
  0x90   : > { %317 = vst [vmem:[#allocation2 + $0x30] sm:$0xff] %v3109_v0  ;;  %318 = vst [vmem:[#allocation2 + $0x48] sm:$0xff] %v3109_v0 }
  0x91   : > { %319 = vst [vmem:[#allocation2 + $0x80] sm:$0xff] %v3109_v0  ;;  %320 = vst [vmem:[#allocation2 + $0x88] sm:$0xff] %v3109_v0 }
  0x92   : > { %321 = vst [vmem:[#allocation2 + $0xe8] sm:$0xff] %v3109_v0  ;;  %322 = vst [vmem:[#allocation2 + $0xb8] sm:$0xff] %v3109_v0 }
  0x93   : > { %323 = vst [vmem:[#allocation2 + $0x60] sm:$0xff] %v3109_v0  ;;  %324 = vst [vmem:[#allocation2 + $0xf0] sm:$0xff] %v3109_v0 }
  0x94   : > { %325 = vst [vmem:[#allocation2 + $0x8] sm:$0xff] %v3109_v0  ;;  %326 = vst [vmem:[#allocation2 + $0x78] sm:$0xff] %v3109_v0 }
  0x95   : > { %327 = vst [vmem:[#allocation2 + $0x38] sm:$0xff] %v3109_v0  ;;  %328 = vst [vmem:[#allocation2 + $0x58] sm:$0xff] %v3109_v0 }
  0x96   : > { %329 = vst [vmem:[#allocation2 + $0x40] sm:$0xff] %v3109_v0  ;;  %330 = vst [vmem:[#allocation2 + $0xc8] sm:$0xff] %v3109_v0 }
  0x97   : > { %331 = vst [vmem:[#allocation2 + $0xe0] sm:$0xff] %v3109_v0  ;;  %332 = vst [vmem:[#allocation2 + $0x90] sm:$0xff] %v3109_v0 }
  0x98   : > { %333 = vst [vmem:[#allocation2 + $0x70] sm:$0xff] %v3109_v0  ;;  %334 = vst [vmem:[#allocation2 + $0xc0] sm:$0xff] %v3109_v0 }
  0x99   : > { %335 = vst [vmem:[#allocation2 + $0xa8] sm:$0xff] %v3109_v0  ;;  %336 = vst [vmem:[#allocation2 + $0xd0] sm:$0xff] %v3109_v0 }
  0x9a   : > { %337 = vst [vmem:[#allocation2 + $0x10] sm:$0xff] %v3109_v0  ;;  %338 = vst [vmem:[#allocation2 + $0x28] sm:$0xff] %v3109_v0 }
  0x9b   : > { %339 = vst [vmem:[#allocation2 + $0xa0] sm:$0xff] %v3109_v0  ;;  %340 = vst [vmem:[#allocation2 + $0xf8] sm:$0xff] %v3109_v0 }
  0x9c   : > { %341 = vst [vmem:[#allocation2 + $0x20] sm:$0xff] %v3109_v0  ;;  %342 = vst [vmem:[#allocation2 + $0x98] sm:$0xff] %v3109_v0 }
  0x9d PF: > { %v3387_v1 = vld [vmem:[%s3358_s12 + $0x78] sm:$0xf]  ;;  %v3390_v2 = vld [vmem:[%s3358_s12 + $0x7c] sm:$0xf]  ;;  %v3401_v6 = vld [vmem:[%s3358_s12 + $0x70] sm:$0xf] }
  0x9e   : > { %v3393_v3 = vld [vmem:[%s3358_s12 + $0x38] sm:$0xf]  ;;  %v2069_v4 = vcombine.low %v3387_v1, %v3390_v2  ;;  %v3398_v5 = vld [vmem:[%s3358_s12 + $0x3c] sm:$0xf]  ;;  %v3404_v7 = vld [vmem:[%s3358_s12 + $0x74] sm:$0xf] }
  0x9f   : > { %v2061_v8 = vcombine.low %v3393_v3, %v3398_v5  ;;  %v2068_v9 = vcombine.low %v3401_v6, %v3404_v7  ;;  %v3411_v10 = vld [vmem:[%s3358_s12 + $0x30] sm:$0xf]  ;;  %v3414_v11 = vld [vmem:[%s3358_s12 + $0x34] sm:$0xf]  ;;  %v3417_v12 = vld [vmem:[%s3358_s12 + $0x68] sm:$0xf] }
  0xa0   : > { %2159 = vmatprep.subr.bf16.mxu0 %v2069_v4  ;;  %2527 = vmatprep.subr.bf16.mxu1 %v2069_v4  ;;  %v3420_v13 = vld [vmem:[%s3358_s12 + $0x6c] sm:$0xf]  ;;  %v2060_v14 = vcombine.low %v3411_v10, %v3414_v11  ;;  %v3427_v16 = vld [vmem:[%s3358_s12 + $0x28] sm:$0xf]  ;;  %v3433_v18 = vld [vmem:[%s3358_s12 + $0x60] sm:$0xf] }
  0xa1   : > { %2160 = vmatpush3.bf16.msra.mxu0 %v2061_v8  ;;  %2535 = vmatpush3.bf16.msra.mxu1 %v2061_v8  ;;  %v2067_v15 = vcombine.low %v3417_v12, %v3420_v13  ;;  %v3430_v17 = vld [vmem:[%s3358_s12 + $0x2c] sm:$0xf]  ;;  %v3436_v19 = vld [vmem:[%s3358_s12 + $0x64] sm:$0xf]  ;;  %v3443_v22 = vld [vmem:[%s3358_s12 + $0x20] sm:$0xf] }
  0xa2   : > { %2161 = vmatprep.subr.bf16.mxu0 %v2068_v9  ;;  %2528 = vmatprep.subr.bf16.mxu1 %v2068_v9  ;;  %v2059_v20 = vcombine.low %v3427_v16, %v3430_v17  ;;  %v2066_v21 = vcombine.low %v3433_v18, %v3436_v19  ;;  %v3446_v23 = vld [vmem:[%s3358_s12 + $0x24] sm:$0xf]  ;;  %v3449_v24 = vld [vmem:[%s3358_s12 + $0x58] sm:$0xf]  ;;  %v3452_v25 = vld [vmem:[%s3358_s12 + $0x5c] sm:$0xf] }
  0xa3   : > { %v3455_v26 = vld [vmem:[%s3358_s12 + $0x18] sm:$0xf]  ;;  %v3458_v27 = vld [vmem:[%s3358_s12 + $0x1c] sm:$0xf]  ;;  %v2722_v28 = vld [vmem:[%s3366_s18 + $0x4] ss:$8 sps:$4 sm:$0xff]   ;;  %v2058_v29 = vcombine.low %v3443_v22, %v3446_v23  ;;  %v2065_v31 = vcombine.low %v3449_v24, %v3452_v25 }
  0xa4   : > { %v3464_v30 = vld [vmem:[%s3358_s12 + $0x50] sm:$0xf]  ;;  %v2725_v32 = vld [vmem:[%s3366_s18 + $0x84] ss:$8 sps:$4 sm:$0xff]   ;;  %v3470_v33 = vld [vmem:[%s3358_s12 + $0x54] sm:$0xf]  ;;  %727 = vmatprep.mubr.bf16.mxu0 %v2722_v28  ;;  %v2057_v34 = vcombine.low %v3455_v26, %v3458_v27 }
  0xa5   : > { %2162 = vmatpush3.bf16.msra.mxu0 %v2060_v14  ;;  %2536 = vmatpush3.bf16.msra.mxu1 %v2060_v14  ;;  %v3475_v35 = vld [vmem:[%s3358_s12 + $0x10] sm:$0xf]  ;;  %v2064_v36 = vcombine.low %v3464_v30, %v3470_v33  ;;  %v3480_v37 = vld [vmem:[%s3358_s12 + $0x14] sm:$0xf]  ;;  %v3483_v38 = vld [vmem:[%s3358_s12 + $0x48] sm:$0xf] }
  0xa6   : > { %2163 = vmatprep.subr.bf16.mxu0 %v2067_v15  ;;  %2529 = vmatprep.subr.bf16.mxu1 %v2067_v15  ;;  %v3486_v39 = vld [vmem:[%s3358_s12 + $0x4c] sm:$0xf]  ;;  %v2056_v40 = vcombine.low %v3475_v35, %v3480_v37  ;;  %v3491_v41 = vld [vmem:[%s3358_s12 + $0x8] sm:$0xf]  ;;  %v3499_v44 = vld [vmem:[%s3358_s12 + $0x40] sm:$0xf] }
  0xa7   : > { %791 = vmatprep.mubr.bf16.mxu1 %v2725_v32  ;;  %v3494_v42 = vld [vmem:[%s3358_s12 + $0xc] sm:$0xf]  ;;  %v2063_v43 = vcombine.low %v3483_v38, %v3486_v39  ;;  %v3502_v45 = vld [vmem:[%s3358_s12 + $0x44] sm:$0xf]  ;;  %v3507_v47 = vld [vmem:[%s3358_s12] sm:$0xf] }
  0xa8   : > { %v2055_v46 = vcombine.low %v3491_v41, %v3494_v42  ;;  %v2062_v48 = vcombine.low %v3499_v44, %v3502_v45  ;;  %v3512_v49 = vld [vmem:[%s3358_s12 + $0x4] sm:$0xf]  ;;  %v2720_v51 = vld [vmem:[%s3366_s18] ss:$8 sps:$4 sm:$0xff]   ;;  %v2726_v53 = vld [vmem:[%s3366_s18 + $0x14] ss:$8 sps:$4 sm:$0xff]  }
  0xa9   : > { %2164 = vmatpush3.bf16.msra.mxu0 %v2059_v20  ;;  %2537 = vmatpush3.bf16.msra.mxu1 %v2059_v20  ;;  %v2054_v50 = vcombine.low %v3507_v47, %v3512_v49  ;;  %v2723_v52 = vld [vmem:[%s3366_s18 + $0x80] ss:$8 sps:$4 sm:$0xff]   ;;  %v2728_v54 = vld [vmem:[%s3366_s18 + $0x94] ss:$8 sps:$4 sm:$0xff]   ;;  %v2730_v55 = vld [vmem:[%s3366_s18 + $0x10] ss:$8 sps:$4 sm:$0xff]  }
  0xaa   : > { %2165 = vmatprep.subr.bf16.mxu0 %v2066_v21  ;;  %2530 = vmatprep.subr.bf16.mxu1 %v2066_v21  ;;  %v2731_v56 = vld [vmem:[%s3366_s18 + $0x90] ss:$8 sps:$4 sm:$0xff]   ;;  %v2732_v57 = vld [vmem:[%s3366_s18 + $0x24] ss:$8 sps:$4 sm:$0xff]   ;;  %v2736_v59 = vld [vmem:[%s3366_s18 + $0x20] ss:$8 sps:$4 sm:$0xff]  }
  0xab   : > { %v2734_v58 = vld [vmem:[%s3366_s18 + $0xa4] ss:$8 sps:$4 sm:$0xff]   ;;  %v2737_v60 = vld [vmem:[%s3366_s18 + $0xa0] ss:$8 sps:$4 sm:$0xff]   ;;  %v2738_v61 = vld [vmem:[%s3366_s18 + $0x34] ss:$8 sps:$4 sm:$0xff]  }
  0xac   : > { %v2740_v62 = vld [vmem:[%s3366_s18 + $0xb4] ss:$8 sps:$4 sm:$0xff]   ;;  %v2742_v63 = vld [vmem:[%s3366_s18 + $0x30] ss:$8 sps:$4 sm:$0xff]   ;;  %v2744_v4 = vld [vmem:[%s3366_s18 + $0x44] ss:$8 sps:$4 sm:$0xff]  }
  0xad   : > { %2166 = vmatpush3.bf16.msra.mxu0 %v2058_v29  ;;  %2538 = vmatpush3.bf16.msra.mxu1 %v2058_v29  ;;  %v2743_v0 = vld [vmem:[%s3366_s18 + $0xb0] ss:$8 sps:$4 sm:$0xff]   ;;  %v2746_v8 = vld [vmem:[%s3366_s18 + $0xc4] ss:$8 sps:$4 sm:$0xff]   ;;  %v2748_v9 = vld [vmem:[%s3366_s18 + $0x40] ss:$8 sps:$4 sm:$0xff]  }
  0xae   : > { %2167 = vmatprep.subr.bf16.mxu0 %v2065_v31  ;;  %2531 = vmatprep.subr.bf16.mxu1 %v2065_v31  ;;  %v2749_v14 = vld [vmem:[%s3366_s18 + $0xc0] ss:$8 sps:$4 sm:$0xff]   ;;  %v2750_v15 = vld [vmem:[%s3366_s18 + $0x54] ss:$8 sps:$4 sm:$0xff]   ;;  %v2754_v21 = vld [vmem:[%s3366_s18 + $0x50] ss:$8 sps:$4 sm:$0xff]  }
  0xaf   : > { %v2752_v20 = vld [vmem:[%s3366_s18 + $0xd4] ss:$8 sps:$4 sm:$0xff]   ;;  %v2755_v28 = vld [vmem:[%s3366_s18 + $0xd0] ss:$8 sps:$4 sm:$0xff]   ;;  %v2756_v29 = vld [vmem:[%s3366_s18 + $0x64] ss:$8 sps:$4 sm:$0xff]  }
  0xb0   : > { %v2758_v31 = vld [vmem:[%s3366_s18 + $0xe4] ss:$8 sps:$4 sm:$0xff]   ;;  %v2760_v32 = vld [vmem:[%s3366_s18 + $0x60] ss:$8 sps:$4 sm:$0xff]   ;;  %s3897_s29 = sld [smem:[#allocation22_spill]] }
  0xb1   : > { %2168 = vmatpush3.bf16.msra.mxu0 %v2057_v34  ;;  %2539 = vmatpush3.bf16.msra.mxu1 %v2057_v34  ;;  %v2761_v34 = vld [vmem:[%s3366_s18 + $0xe0] ss:$8 sps:$4 sm:$0xff]   ;;  %s3898_s30 = sld [smem:[#allocation21_spill]] }
  0xb2   : > { %2169 = vmatprep.subr.bf16.mxu0 %v2064_v36  ;;  %2532 = vmatprep.subr.bf16.mxu1 %v2064_v36  ;;  %v2762_v36 = vld [vmem:[%s3366_s18 + $0x74] ss:$8 sps:$4 sm:$0xff]  }
  0xb5   : > { %2170 = vmatpush3.bf16.msra.mxu0 %v2056_v40  ;;  %2540 = vmatpush3.bf16.msra.mxu1 %v2056_v40  ;;  %v2764_v40 = vld [vmem:[%s3366_s18 + $0xf4] ss:$8 sps:$4 sm:$0xff]  }
  0xb6   : > { %2171 = vmatprep.subr.bf16.mxu0 %v2063_v43  ;;  %2533 = vmatprep.subr.bf16.mxu1 %v2063_v43  ;;  %v2766_v43 = vld [vmem:[%s3366_s18 + $0x70] ss:$8 sps:$4 sm:$0xff]  }
  0xb7   : > { %p2070_p6 = scmp.ne.s32.totalorder %s3898_s30, %s3897_s29 }
  0xb9   : > { %2172 = vmatpush3.bf16.msra.mxu0 %v2055_v46  ;;  %2541 = vmatpush3.bf16.msra.mxu1 %v2055_v46  ;;  %v2767_v46 = vld [vmem:[%s3366_s18 + $0xf0] ss:$8 sps:$4 sm:$0xff]  }
  0xba   : > { %2173 = vmatprep.subr.bf16.mxu0 %v2062_v48  ;;  %2534 = vmatprep.subr.bf16.mxu1 %v2062_v48 }
  0xbd   : > { %2174 = vmatpush3.bf16.msra.mxu0 %v2054_v50  ;;  %2542 = vmatpush3.bf16.msra.mxu1 %v2054_v50 }
  0xc0   : > { %728 = vmatmul.mubr.bf16.vlgmr.msra.gmra.mxu0 %v2720_v51  ;;  %792 = vmatmul.mubr.bf16.vlgmr.msra.gmra.mxu1 %v2723_v52  ;;  %v407_v51 = vld [vmem:[#allocation2 + $0xb0] sm:$0xff] }
  0xc1   : > { %735 = vmatprep.mubr.bf16.mxu0 %v2726_v53  ;;  %799 = vmatprep.mubr.bf16.mxu1 %v2728_v54  ;;  %v423_v53 = vld [vmem:[#allocation2 + $0x38] sm:$0xff] }
  0xc8   : > { %736 = vmatmul.mubr.bf16.gmra.mxu0 %v2730_v55  ;;  %800 = vmatmul.mubr.bf16.gmra.mxu1 %v2731_v56 }
  0xc9   : > { %743 = vmatprep.mubr.bf16.mxu0 %v2732_v57  ;;  %807 = vmatprep.mubr.bf16.mxu1 %v2734_v58 }
  0xd0   : > { %744 = vmatmul.mubr.bf16.gmra.mxu0 %v2736_v59  ;;  %808 = vmatmul.mubr.bf16.gmra.mxu1 %v2737_v60 }
  0xd1   : > { %751 = vmatprep.mubr.bf16.mxu0 %v2738_v61  ;;  %815 = vmatprep.mubr.bf16.mxu1 %v2740_v62  ;;  %v408_v61 = vld [vmem:[#allocation2] sm:$0xff] }
  0xd8   : > { %752 = vmatmul.mubr.bf16.gmra.mxu0 %v2742_v63  ;;  %816 = vmatmul.mubr.bf16.gmra.mxu1 %v2743_v0  ;;  %v424_v63 = vld [vmem:[#allocation2 + $0x58] sm:$0xff] }
  0xd9   : > { %759 = vmatprep.mubr.bf16.mxu0 %v2744_v4  ;;  %823 = vmatprep.mubr.bf16.mxu1 %v2746_v8 }
  0xe0   : > { %760 = vmatmul.mubr.bf16.gmra.mxu0 %v2748_v9  ;;  %824 = vmatmul.mubr.bf16.gmra.mxu1 %v2749_v14 }
  0xe1   : > { %767 = vmatprep.mubr.bf16.mxu0 %v2750_v15  ;;  %831 = vmatprep.mubr.bf16.mxu1 %v2752_v20 }
  0xe8   : > { %768 = vmatmul.mubr.bf16.gmra.mxu0 %v2754_v21  ;;  %832 = vmatmul.mubr.bf16.gmra.mxu1 %v2755_v28  ;;  %v409_v21 = vld [vmem:[#allocation2 + $0xd8] sm:$0xff] }
  0xe9   : > { %775 = vmatprep.mubr.bf16.mxu0 %v2756_v29  ;;  %839 = vmatprep.mubr.bf16.mxu1 %v2758_v31  ;;  %v425_v29 = vld [vmem:[#allocation2 + $0x40] sm:$0xff] }
  0xf0   : > { %776 = vmatmul.mubr.bf16.gmra.mxu0 %v2760_v32  ;;  %840 = vmatmul.mubr.bf16.gmra.mxu1 %v2761_v34 }
  0xf1   : > { %783 = vmatprep.mubr.bf16.mxu0 %v2762_v36  ;;  %847 = vmatprep.mubr.bf16.mxu1 %v2764_v40 }
  0xf8   : > { %784 = vmatmul.mubr.bf16.gmra.mxu0 %v2766_v43  ;;  %848 = vmatmul.mubr.bf16.gmra.mxu1 %v2767_v46 }
 0x180   : > { %v2175_v48 = vpop.f32.mrf.mxu0  ;;  %v2223_v50 = vpop.f32.mrf.mxu1 }
 0x182   : > { %v2176_v52 = vpop.f32.mrf.mxu0  ;;  %v2224_v54 = vpop.f32.mrf.mxu1 }
 0x183   : > { %v2177_v55 = vadd.f32 %v2176_v52, %v2175_v48  ;;  %v2225_v56 = vadd.f32 %v2224_v54, %v2223_v50  ;;  %v410_v48 = vld [vmem:[#allocation2 + $0x18] sm:$0xff] }
 0x184   : > { %v2178_v57 = vpop.f32.mrf.mxu0  ;;  %v2226_v58 = vpop.f32.mrf.mxu1 }
 0x185   : > { %v856_v59 = vadd.f32 %v2177_v55, %v407_v51  ;;  %v872_v60 = vadd.f32 %v2225_v56, %v423_v53  ;;  %v426_v51 = vld [vmem:[#allocation2 + $0xc8] sm:$0xff] }
 0x186   : > { %v2179_v62 = vpop.f32.mrf.mxu0  ;;  %v2227_v0 = vpop.f32.mrf.mxu1 }
 0x187   : > { %888 = vst [vmem:[#allocation2 + $0xb0] sm:$0xff] %v856_v59  ;;  %904 = vst [vmem:[#allocation2 + $0x38] sm:$0xff] %v872_v60  ;;  %v2180_v4 = vadd.f32 %v2179_v62, %v2178_v57  ;;  %v2228_v8 = vadd.f32 %v2227_v0, %v2226_v58  ;;  %v411_v59 = vld [vmem:[#allocation2 + $0x50] sm:$0xff] }
 0x188   : > { %v2181_v9 = vpop.f32.mrf.mxu0  ;;  %v2229_v14 = vpop.f32.mrf.mxu1 }
 0x189   : > { %v857_v15 = vadd.f32 %v2180_v4, %v408_v61  ;;  %v873_v20 = vadd.f32 %v2228_v8, %v424_v63  ;;  %v427_v61 = vld [vmem:[#allocation2 + $0xe0] sm:$0xff] }
 0x18a   : > { %v2182_v28 = vpop.f32.mrf.mxu0  ;;  %v2230_v31 = vpop.f32.mrf.mxu1 }
 0x18b   : > { %889 = vst [vmem:[#allocation2] sm:$0xff] %v857_v15  ;;  %905 = vst [vmem:[#allocation2 + $0x58] sm:$0xff] %v873_v20  ;;  %v2183_v32 = vadd.f32 %v2182_v28, %v2181_v9  ;;  %v2231_v34 = vadd.f32 %v2230_v31, %v2229_v14  ;;  %v412_v15 = vld [vmem:[#allocation2 + $0x68] sm:$0xff] }
 0x18c   : > { %v2184_v36 = vpop.f32.mrf.mxu0  ;;  %v2232_v40 = vpop.f32.mrf.mxu1 }
 0x18d   : > { %v858_v43 = vadd.f32 %v2183_v32, %v409_v21  ;;  %v874_v46 = vadd.f32 %v2231_v34, %v425_v29  ;;  %v428_v21 = vld [vmem:[#allocation2 + $0x90] sm:$0xff] }
 0x18e   : > { %v2185_v50 = vpop.f32.mrf.mxu0  ;;  %v2233_v52 = vpop.f32.mrf.mxu1 }
 0x18f   : > { %890 = vst [vmem:[#allocation2 + $0xd8] sm:$0xff] %v858_v43  ;;  %906 = vst [vmem:[#allocation2 + $0x40] sm:$0xff] %v874_v46  ;;  %v2186_v53 = vadd.f32 %v2185_v50, %v2184_v36  ;;  %v2234_v54 = vadd.f32 %v2233_v52, %v2232_v40  ;;  %v413_v43 = vld [vmem:[#allocation2 + $0x30] sm:$0xff] }
 0x190   : > { %v2187_v55 = vpop.f32.mrf.mxu0  ;;  %v2235_v56 = vpop.f32.mrf.mxu1 }
 0x191   : > { %v859_v57 = vadd.f32 %v2186_v53, %v410_v48  ;;  %v875_v58 = vadd.f32 %v2234_v54, %v426_v51  ;;  %v429_v48 = vld [vmem:[#allocation2 + $0x70] sm:$0xff] }
 0x192   : > { %v2188_v60 = vpop.f32.mrf.mxu0  ;;  %v2236_v62 = vpop.f32.mrf.mxu1 }
 0x193   : > { %891 = vst [vmem:[#allocation2 + $0x18] sm:$0xff] %v859_v57  ;;  %907 = vst [vmem:[#allocation2 + $0xc8] sm:$0xff] %v875_v58  ;;  %v2189_v63 = vadd.f32 %v2188_v60, %v2187_v55  ;;  %v2237_v0 = vadd.f32 %v2236_v62, %v2235_v56  ;;  %v414_v57 = vld [vmem:[#allocation2 + $0x48] sm:$0xff] }
 0x194   : > { %v2190_v4 = vpop.f32.mrf.mxu0  ;;  %v2238_v8 = vpop.f32.mrf.mxu1 }
 0x195   : > { %v860_v9 = vadd.f32 %v2189_v63, %v411_v59  ;;  %v876_v14 = vadd.f32 %v2237_v0, %v427_v61  ;;  %v430_v59 = vld [vmem:[#allocation2 + $0xc0] sm:$0xff] }
 0x196   : > { %v2191_v20 = vpop.f32.mrf.mxu0  ;;  %v2239_v28 = vpop.f32.mrf.mxu1 }
 0x197   : > { %892 = vst [vmem:[#allocation2 + $0x50] sm:$0xff] %v860_v9  ;;  %908 = vst [vmem:[#allocation2 + $0xe0] sm:$0xff] %v876_v14  ;;  %v2192_v29 = vadd.f32 %v2191_v20, %v2190_v4  ;;  %v2240_v31 = vadd.f32 %v2239_v28, %v2238_v8  ;;  %v415_v9 = vld [vmem:[#allocation2 + $0x80] sm:$0xff] }
 0x198   : > { %v2193_v32 = vpop.f32.mrf.mxu0  ;;  %v2241_v34 = vpop.f32.mrf.mxu1 }
 0x199   : > { %v861_v36 = vadd.f32 %v2192_v29, %v412_v15  ;;  %v877_v40 = vadd.f32 %v2240_v31, %v428_v21  ;;  %v431_v15 = vld [vmem:[#allocation2 + $0xa8] sm:$0xff] }
 0x19a   : > { %v2194_v46 = vpop.f32.mrf.mxu0  ;;  %v2242_v50 = vpop.f32.mrf.mxu1 }
 0x19b   : > { %893 = vst [vmem:[#allocation2 + $0x68] sm:$0xff] %v861_v36  ;;  %909 = vst [vmem:[#allocation2 + $0x90] sm:$0xff] %v877_v40  ;;  %v2195_v51 = vadd.f32 %v2194_v46, %v2193_v32  ;;  %v2243_v52 = vadd.f32 %v2242_v50, %v2241_v34  ;;  %v416_v36 = vld [vmem:[#allocation2 + $0x88] sm:$0xff] }
 0x19c   : > { %v2196_v53 = vpop.f32.mrf.mxu0  ;;  %v2244_v54 = vpop.f32.mrf.mxu1 }
 0x19d   : > { %v862_v55 = vadd.f32 %v2195_v51, %v413_v43  ;;  %v878_v56 = vadd.f32 %v2243_v52, %v429_v48  ;;  %v432_v43 = vld [vmem:[#allocation2 + $0xd0] sm:$0xff] }
 0x19e   : > { %v2197_v58 = vpop.f32.mrf.mxu0  ;;  %v2245_v60 = vpop.f32.mrf.mxu1 }
 0x19f   : > { %894 = vst [vmem:[#allocation2 + $0x30] sm:$0xff] %v862_v55  ;;  %910 = vst [vmem:[#allocation2 + $0x70] sm:$0xff] %v878_v56  ;;  %v2198_v61 = vadd.f32 %v2197_v58, %v2196_v53  ;;  %v2246_v62 = vadd.f32 %v2245_v60, %v2244_v54  ;;  %v417_v55 = vld [vmem:[#allocation2 + $0xe8] sm:$0xff] }
 0x1a0   : > { %v2199_v63 = vpop.f32.mrf.mxu0  ;;  %v2247_v0 = vpop.f32.mrf.mxu1 }
 0x1a1   : > { %v863_v4 = vadd.f32 %v2198_v61, %v414_v57  ;;  %v879_v8 = vadd.f32 %v2246_v62, %v430_v59  ;;  %v433_v57 = vld [vmem:[#allocation2 + $0x10] sm:$0xff] }
 0x1a2   : > { %v2200_v14 = vpop.f32.mrf.mxu0  ;;  %v2248_v20 = vpop.f32.mrf.mxu1 }
 0x1a3   : > { %895 = vst [vmem:[#allocation2 + $0x48] sm:$0xff] %v863_v4  ;;  %911 = vst [vmem:[#allocation2 + $0xc0] sm:$0xff] %v879_v8  ;;  %v2201_v21 = vadd.f32 %v2200_v14, %v2199_v63  ;;  %v2249_v28 = vadd.f32 %v2248_v20, %v2247_v0  ;;  %v418_v4 = vld [vmem:[#allocation2 + $0xb8] sm:$0xff] }
 0x1a4   : > { %v2202_v29 = vpop.f32.mrf.mxu0  ;;  %v2250_v31 = vpop.f32.mrf.mxu1 }
 0x1a5   : > { %v864_v32 = vadd.f32 %v2201_v21, %v415_v9  ;;  %v880_v34 = vadd.f32 %v2249_v28, %v431_v15  ;;  %v434_v9 = vld [vmem:[#allocation2 + $0x28] sm:$0xff] }
 0x1a6   : > { %v2203_v40 = vpop.f32.mrf.mxu0  ;;  %v2251_v46 = vpop.f32.mrf.mxu1 }
 0x1a7   : > { %896 = vst [vmem:[#allocation2 + $0x80] sm:$0xff] %v864_v32  ;;  %912 = vst [vmem:[#allocation2 + $0xa8] sm:$0xff] %v880_v34  ;;  %v2204_v48 = vadd.f32 %v2203_v40, %v2202_v29  ;;  %v2252_v50 = vadd.f32 %v2251_v46, %v2250_v31  ;;  %v419_v32 = vld [vmem:[#allocation2 + $0x60] sm:$0xff] }
 0x1a8   : > { %v2205_v51 = vpop.f32.mrf.mxu0  ;;  %v2253_v52 = vpop.f32.mrf.mxu1 }
 0x1a9   : > { %v865_v53 = vadd.f32 %v2204_v48, %v416_v36  ;;  %v881_v54 = vadd.f32 %v2252_v50, %v432_v43  ;;  %v435_v36 = vld [vmem:[#allocation2 + $0xa0] sm:$0xff] }
 0x1aa   : > { %v2206_v56 = vpop.f32.mrf.mxu0  ;;  %v2254_v58 = vpop.f32.mrf.mxu1 }
 0x1ab   : > { %897 = vst [vmem:[#allocation2 + $0x88] sm:$0xff] %v865_v53  ;;  %913 = vst [vmem:[#allocation2 + $0xd0] sm:$0xff] %v881_v54  ;;  %v2207_v59 = vadd.f32 %v2206_v56, %v2205_v51  ;;  %v2255_v60 = vadd.f32 %v2254_v58, %v2253_v52  ;;  %v420_v53 = vld [vmem:[#allocation2 + $0xf0] sm:$0xff] }
 0x1ac   : > { %v2208_v61 = vpop.f32.mrf.mxu0  ;;  %v2256_v62 = vpop.f32.mrf.mxu1 }
 0x1ad   : > { %v866_v63 = vadd.f32 %v2207_v59, %v417_v55  ;;  %v882_v0 = vadd.f32 %v2255_v60, %v433_v57  ;;  %v436_v55 = vld [vmem:[#allocation2 + $0xf8] sm:$0xff] }
 0x1ae   : > { %v2209_v8 = vpop.f32.mrf.mxu0  ;;  %v2257_v14 = vpop.f32.mrf.mxu1 }
 0x1af   : > { %898 = vst [vmem:[#allocation2 + $0xe8] sm:$0xff] %v866_v63  ;;  %914 = vst [vmem:[#allocation2 + $0x10] sm:$0xff] %v882_v0  ;;  %v2210_v15 = vadd.f32 %v2209_v8, %v2208_v61  ;;  %v2258_v20 = vadd.f32 %v2257_v14, %v2256_v62  ;;  %v421_v63 = vld [vmem:[#allocation2 + $0x8] sm:$0xff] }
 0x1b0   : > { %v2211_v21 = vpop.f32.mrf.mxu0  ;;  %v2259_v28 = vpop.f32.mrf.mxu1 }
 0x1b1   : > { %v867_v29 = vadd.f32 %v2210_v15, %v418_v4  ;;  %v883_v31 = vadd.f32 %v2258_v20, %v434_v9  ;;  %v437_v4 = vld [vmem:[#allocation2 + $0x20] sm:$0xff] }
 0x1b2   : > { %v2212_v34 = vpop.f32.mrf.mxu0  ;;  %v2260_v40 = vpop.f32.mrf.mxu1 }
 0x1b3   : > { %899 = vst [vmem:[#allocation2 + $0xb8] sm:$0xff] %v867_v29  ;;  %915 = vst [vmem:[#allocation2 + $0x28] sm:$0xff] %v883_v31  ;;  %v2213_v43 = vadd.f32 %v2212_v34, %v2211_v21  ;;  %v2261_v46 = vadd.f32 %v2260_v40, %v2259_v28  ;;  %v422_v29 = vld [vmem:[#allocation2 + $0x78] sm:$0xff] }
 0x1b4   : > { %v2214_v48 = vpop.f32.mrf.mxu0  ;;  %v2262_v50 = vpop.f32.mrf.mxu1 }
 0x1b5   : > { %v868_v51 = vadd.f32 %v2213_v43, %v419_v32  ;;  %v884_v52 = vadd.f32 %v2261_v46, %v435_v36  ;;  %v438_v32 = vld [vmem:[#allocation2 + $0x98] sm:$0xff] }
 0x1b6   : > { %v2215_v54 = vpop.f32.mrf.mxu0  ;;  %v2263_v56 = vpop.f32.mrf.mxu1 }
 0x1b7   : > { %900 = vst [vmem:[#allocation2 + $0x60] sm:$0xff] %v868_v51  ;;  %916 = vst [vmem:[#allocation2 + $0xa0] sm:$0xff] %v884_v52  ;;  %v2216_v57 = vadd.f32 %v2215_v54, %v2214_v48  ;;  %v2264_v58 = vadd.f32 %v2263_v56, %v2262_v50 }
 0x1b8   : > { %v2217_v59 = vpop.f32.mrf.mxu0  ;;  %v2265_v60 = vpop.f32.mrf.mxu1 }
 0x1b9   : > { %v869_v61 = vadd.f32 %v2216_v57, %v420_v53  ;;  %v885_v62 = vadd.f32 %v2264_v58, %v436_v55 }
 0x1ba   : > { %v2218_v0 = vpop.f32.mrf.mxu0  ;;  %v2266_v8 = vpop.f32.mrf.mxu1 }
 0x1bb   : > { %901 = vst [vmem:[#allocation2 + $0xf0] sm:$0xff] %v869_v61  ;;  %917 = vst [vmem:[#allocation2 + $0xf8] sm:$0xff] %v885_v62  ;;  %v2219_v9 = vadd.f32 %v2218_v0, %v2217_v59  ;;  %v2267_v14 = vadd.f32 %v2266_v8, %v2265_v60 }
 0x1bc   : > { %v2220_v15 = vpop.f32.mrf.mxu0  ;;  %v2268_v20 = vpop.f32.mrf.mxu1 }
 0x1bd   : > { %v870_v21 = vadd.f32 %v2219_v9, %v421_v63  ;;  %v886_v28 = vadd.f32 %v2267_v14, %v437_v4 }
 0x1be   : > { %v2221_v31 = vpop.f32.mrf.mxu0  ;;  %v2269_v34 = vpop.f32.mrf.mxu1 }
 0x1bf   : > { %902 = vst [vmem:[#allocation2 + $0x8] sm:$0xff] %v870_v21  ;;  %918 = vst [vmem:[#allocation2 + $0x20] sm:$0xff] %v886_v28  ;;  %v2222_v36 = vadd.f32 %v2221_v31, %v2220_v15  ;;  %v2270_v40 = vadd.f32 %v2269_v34, %v2268_v20  ;;  %923 = sbr.rel (%p2070_p6) target bundleno = 468 (0x1d4), region = 60 }
 0x1c1   : > { %v871_v43 = vadd.f32 %v2222_v36, %v422_v29  ;;  %v887_v46 = vadd.f32 %v2270_v40, %v438_v32 }
 0x1c3   : > { %903 = vst [vmem:[#allocation2 + $0x78] sm:$0xff] %v871_v43  ;;  %919 = vst [vmem:[#allocation2 + $0x98] sm:$0xff] %v887_v46 }
 0x1c4   : > { %924 = vst [vmem:[#allocation3] sm:$0xf] %v3507_v47  ;;  %925 = vst [vmem:[#allocation3 + $0x4] sm:$0xf] %v3512_v49 }
 0x1c5   : > { %926 = vst [vmem:[#allocation3 + $0x8] sm:$0xf] %v3491_v41  ;;  %927 = vst [vmem:[#allocation3 + $0xc] sm:$0xf] %v3494_v42 }
 0x1c6   : > { %928 = vst [vmem:[#allocation3 + $0x10] sm:$0xf] %v3475_v35  ;;  %929 = vst [vmem:[#allocation3 + $0x14] sm:$0xf] %v3480_v37 }
 0x1c7   : > { %930 = vst [vmem:[#allocation3 + $0x18] sm:$0xf] %v3455_v26  ;;  %931 = vst [vmem:[#allocation3 + $0x1c] sm:$0xf] %v3458_v27 }
 0x1c8   : > { %932 = vst [vmem:[#allocation3 + $0x20] sm:$0xf] %v3443_v22  ;;  %933 = vst [vmem:[#allocation3 + $0x24] sm:$0xf] %v3446_v23 }
 0x1c9   : > { %934 = vst [vmem:[#allocation3 + $0x28] sm:$0xf] %v3427_v16  ;;  %935 = vst [vmem:[#allocation3 + $0x2c] sm:$0xf] %v3430_v17 }
 0x1ca   : > { %936 = vst [vmem:[#allocation3 + $0x30] sm:$0xf] %v3411_v10  ;;  %937 = vst [vmem:[#allocation3 + $0x34] sm:$0xf] %v3414_v11 }
 0x1cb   : > { %938 = vst [vmem:[#allocation3 + $0x38] sm:$0xf] %v3393_v3  ;;  %939 = vst [vmem:[#allocation3 + $0x3c] sm:$0xf] %v3398_v5 }
 0x1cc   : > { %940 = vst [vmem:[#allocation3 + $0x40] sm:$0xf] %v3499_v44  ;;  %941 = vst [vmem:[#allocation3 + $0x44] sm:$0xf] %v3502_v45 }
 0x1cd   : > { %942 = vst [vmem:[#allocation3 + $0x48] sm:$0xf] %v3483_v38  ;;  %943 = vst [vmem:[#allocation3 + $0x4c] sm:$0xf] %v3486_v39 }
 0x1ce   : > { %944 = vst [vmem:[#allocation3 + $0x50] sm:$0xf] %v3464_v30  ;;  %945 = vst [vmem:[#allocation3 + $0x54] sm:$0xf] %v3470_v33 }
 0x1cf   : > { %946 = vst [vmem:[#allocation3 + $0x58] sm:$0xf] %v3449_v24  ;;  %947 = vst [vmem:[#allocation3 + $0x5c] sm:$0xf] %v3452_v25 }
 0x1d0   : > { %948 = vst [vmem:[#allocation3 + $0x60] sm:$0xf] %v3433_v18  ;;  %949 = vst [vmem:[#allocation3 + $0x64] sm:$0xf] %v3436_v19 }
 0x1d1   : > { %950 = vst [vmem:[#allocation3 + $0x68] sm:$0xf] %v3417_v12  ;;  %951 = vst [vmem:[#allocation3 + $0x6c] sm:$0xf] %v3420_v13 }
 0x1d2   : > { %952 = vst [vmem:[#allocation3 + $0x70] sm:$0xf] %v3401_v6  ;;  %953 = vst [vmem:[#allocation3 + $0x74] sm:$0xf] %v3404_v7 }
 0x1d3   : > { %954 = vst [vmem:[#allocation3 + $0x78] sm:$0xf] %v3387_v1  ;;  %955 = vst [vmem:[#allocation3 + $0x7c] sm:$0xf] %v3390_v2 }
 0x1d4 PF: > { %s3899_s9 = sld [smem:[#allocation21_spill]] }
 0x1da   : > { %p2071_p1 = scmp.ne.s32.totalorder %s3899_s9, 1 }
 0x1dc   : > { %959 = sbr.rel (%p2071_p1) target bundleno = 889 (0x379), region = 64 }
 0x1e1   : > { %v3581_v3 = vld [vmem:[#allocation2 + $0xd8] sm:$0xff]  ;;  %v3583_v5 = vld [vmem:[#allocation2 + $0xb0] sm:$0xff]  ;;  %v3110_v11 = vmov 16   ;;  %v3590_v2 = vld [vmem:[#allocation2] sm:$0xff] }
 0x1e2   : > { %v3585_v10 = vld [vmem:[#allocation2 + $0x18] sm:$0xff]  ;;  %2769 = vset.pattern.permute.xlu1 %v3110_v11  ;;  %2768 = vset.pattern.permute.xlu0 %v3110_v11  ;;  %v994_v6 = vadd.f32 1.0, %v3581_v3  ;;  %v992_v7 = vadd.f32 1.0, %v3583_v5  ;;  %v993_v12 = vadd.f32 1.0, %v3590_v2  ;;  %v3593_v13 = vld [vmem:[#allocation2 + $0x68] sm:$0xff]  ;;  %v3595_v16 = vld [vmem:[#allocation2 + $0x50] sm:$0xff] }
 0x1e3   : > { %v995_v1 = vadd.f32 1.0, %v3585_v10  ;;  %v997_v17 = vadd.f32 1.0, %v3593_v13  ;;  %v996_v18 = vadd.f32 1.0, %v3595_v16  ;;  %v3599_v19 = vld [vmem:[#allocation2 + $0x48] sm:$0xff]  ;;  %v3601_v22 = vld [vmem:[#allocation2 + $0x30] sm:$0xff]  ;;  %v3607_v26 = vld [vmem:[#allocation2 + $0x80] sm:$0xff] }
 0x1e4   : > { %2770 = vrcp.f32 %v994_v6  ;;  %v999_v23 = vadd.f32 1.0, %v3599_v19  ;;  %v998_v24 = vadd.f32 1.0, %v3601_v22  ;;  %v3605_v25 = vld [vmem:[#allocation2 + $0x88] sm:$0xff]  ;;  %v1327_v27 = vld [vmem:[#allocation9 + $0x78] sm:$0xff]  ;;  %v1326_v33 = vld [vmem:[#allocation9 + $0x70] sm:$0xff]  ;;  %v1000_v41 = vadd.f32 1.0, %v3607_v26 }
 0x1e5   : > { %2772 = vrcp.f32 %v992_v7  ;;  %2447 = vmatprep.subr.mxu1 %v1327_v27  ;;  %v1343_v30 = vld [vmem:[#allocation10 + $0x78] sm:$0xff]  ;;  %v1342_v35 = vld [vmem:[#allocation10 + $0x70] sm:$0xff]  ;;  %v1325_v37 = vld [vmem:[#allocation9 + $0x68] sm:$0xff]  ;;  %v1001_v38 = vadd.f32 1.0, %v3605_v25 }
 0x1e6   : > { %2774 = vrcp.f32 %v995_v1  ;;  %2448 = vmatpush3.msra.mxu1 %v1327_v27  ;;  %2367 = vmatprep.subr.mxu0 %v1343_v30  ;;  %v1341_v39 = vld [vmem:[#allocation10 + $0x68] sm:$0xff]  ;;  %v3611_v42 = vld [vmem:[#allocation2 + $0xb8] sm:$0xff]  ;;  %v1324_v44 = vld [vmem:[#allocation9 + $0x60] sm:$0xff] }
 0x1e7   : > { %2776 = vrcp.f32 %v993_v12  ;;  %2449 = vmatprep.subr.mxu1 %v1326_v33  ;;  %2368 = vmatpush3.msra.mxu0 %v1343_v30  ;;  %v3613_v45 = vld [vmem:[#allocation2 + $0xe8] sm:$0xff]  ;;  %v1340_v49 = vld [vmem:[#allocation10 + $0x60] sm:$0xff]  ;;  %v1003_v50 = vadd.f32 1.0, %v3611_v42  ;;  %v1323_v51 = vld [vmem:[#allocation9 + $0x58] sm:$0xff] }
 0x1e8   : > { %2778 = vrcp.f32 %v997_v17  ;;  %2450 = vmatpush3.msra.mxu1 %v1326_v33  ;;  %2369 = vmatprep.subr.mxu0 %v1342_v35  ;;  %v1002_v53 = vadd.f32 1.0, %v3613_v45  ;;  %v3617_v54 = vld [vmem:[#allocation2 + $0xf0] sm:$0xff]  ;;  %v3619_v56 = vld [vmem:[#allocation2 + $0x60] sm:$0xff]  ;;  %v1339_v57 = vld [vmem:[#allocation10 + $0x58] sm:$0xff] }
 0x1e9   : > { %2780 = vrcp.f32 %v996_v18  ;;  %2451 = vmatprep.subr.mxu1 %v1325_v37  ;;  %2370 = vmatpush3.msra.mxu0 %v1342_v35  ;;  %v1322_v58 = vld [vmem:[#allocation9 + $0x50] sm:$0xff]  ;;  %v1005_v59 = vadd.f32 1.0, %v3617_v54  ;;  %v1004_v62 = vadd.f32 1.0, %v3619_v56  ;;  %v3623_v63 = vld [vmem:[#allocation2 + $0x78] sm:$0xff]  ;;  %v1321_v0 = vld [vmem:[#allocation9 + $0x48] sm:$0xff] }
 0x1ea   : > { %2782 = vrcp.f32 %v999_v23  ;;  %2452 = vmatpush3.msra.mxu1 %v1325_v37  ;;  %2371 = vmatprep.subr.mxu0 %v1341_v39  ;;  %v1338_v60 = vld [vmem:[#allocation10 + $0x50] sm:$0xff]  ;;  %v3625_v8 = vld [vmem:[#allocation2 + $0x8] sm:$0xff]  ;;  %v1007_v14 = vadd.f32 1.0, %v3623_v63  ;;  %v1320_v15 = vld [vmem:[#allocation9 + $0x40] sm:$0xff] }
 0x1eb   : > { %2784 = vrcp.f32 %v998_v24  ;;  %2453 = vmatprep.subr.mxu1 %v1324_v44  ;;  %2372 = vmatpush3.msra.mxu0 %v1341_v39  ;;  %v1337_v9 = vld [vmem:[#allocation10 + $0x48] sm:$0xff]  ;;  %v1006_v21 = vadd.f32 1.0, %v3625_v8  ;;  %v3629_v28 = vld [vmem:[#allocation2 + $0x58] sm:$0xff]  ;;  %v1336_v32 = vld [vmem:[#allocation10 + $0x40] sm:$0xff] }
 0x1ec   : > { %2786 = vrcp.f32 %v1001_v38  ;;  %2454 = vmatpush3.msra.mxu1 %v1324_v44  ;;  %2373 = vmatprep.subr.mxu0 %v1340_v49  ;;  %v3631_v31 = vld [vmem:[#allocation2 + $0x38] sm:$0xff]  ;;  %v1009_v36 = vadd.f32 1.0, %v3629_v28  ;;  %v3635_v11 = vld [vmem:[#allocation2 + $0xc8] sm:$0xff]  ;;  %v1318_v6 = vld [vmem:[#allocation9 + $0x30] sm:$0xff] }
 0x1ed   : > { %2788 = vrcp.f32 %v1000_v41  ;;  %2455 = vmatprep.subr.mxu1 %v1323_v51  ;;  %2374 = vmatpush3.msra.mxu0 %v1340_v49  ;;  %v1319_v34 = vld [vmem:[#allocation9 + $0x38] sm:$0xff]  ;;  %v1008_v46 = vadd.f32 1.0, %v3631_v31  ;;  %v3637_v1 = vld [vmem:[#allocation2 + $0x40] sm:$0xff]  ;;  %v1334_v12 = vld [vmem:[#allocation10 + $0x30] sm:$0xff]  ;;  %v1011_v17 = vadd.f32 1.0, %v3635_v11 }
 0x1ee   : > { %2790 = vrcp.f32 %v1003_v50  ;;  %2456 = vmatpush3.msra.mxu1 %v1323_v51  ;;  %2375 = vmatprep.subr.mxu0 %v1339_v57  ;;  %v1335_v40 = vld [vmem:[#allocation10 + $0x38] sm:$0xff]  ;;  %v1317_v18 = vld [vmem:[#allocation9 + $0x28] sm:$0xff]  ;;  %v1010_v24 = vadd.f32 1.0, %v3637_v1  ;;  %v3641_v27 = vld [vmem:[#allocation2 + $0x90] sm:$0xff] }
 0x1ef   : > { %2792 = vrcp.f32 %v1002_v53  ;;  %2457 = vmatprep.subr.mxu1 %v1322_v58  ;;  %2376 = vmatpush3.msra.mxu0 %v1339_v57  ;;  %v3643_v33 = vld [vmem:[#allocation2 + $0xe0] sm:$0xff]  ;;  %v1333_v35 = vld [vmem:[#allocation10 + $0x28] sm:$0xff]  ;;  %v1013_v38 = vadd.f32 1.0, %v3641_v27  ;;  %v1315_v49 = vld [vmem:[#allocation9 + $0x18] sm:$0xff] }
 0x1f0   : > { %2458 = vmatpush3.msra.mxu1 %v1322_v58  ;;  %2377 = vmatprep.subr.mxu0 %v1338_v60  ;;  %2794 = vrcp.f32 %v1005_v59  ;;  %v1316_v37 = vld [vmem:[#allocation9 + $0x20] sm:$0xff]  ;;  %v1012_v44 = vadd.f32 1.0, %v3643_v33  ;;  %v3649_v50 = vld [vmem:[#allocation2 + $0x70] sm:$0xff]  ;;  %v1331_v51 = vld [vmem:[#allocation10 + $0x18] sm:$0xff] }
 0x1f1   : > { %v2771_v47 = vpop.eup %2770  ;;  %2459 = vmatprep.subr.mxu1 %v1321_v0  ;;  %2796 = vrcp.f32 %v1004_v62  ;;  %2378 = vmatpush3.msra.mxu0 %v1338_v60  ;;  %v1332_v39 = vld [vmem:[#allocation10 + $0x20] sm:$0xff]  ;;  %v1314_v53 = vld [vmem:[#allocation9 + $0x10] sm:$0xff]  ;;  %v1014_v57 = vadd.f32 1.0, %v3649_v50  ;;  %v3655_v60 = vld [vmem:[#allocation2 + $0xa8] sm:$0xff] }
 0x1f2   : > { %v2773_v48 = vpop.eup %2772  ;;  %1068 = vperm.xlu1 %2769, %v2771_v47   ;;  %2460 = vmatpush3.msra.mxu1 %v1321_v0  ;;  %2798 = vrcp.f32 %v1007_v14  ;;  %v3647_v47 = vld [vmem:[#allocation2 + $0xc0] sm:$0xff]  ;;  %v3653_v58 = vld [vmem:[#allocation2 + $0xd0] sm:$0xff]  ;;  %v1313_v62 = vld [vmem:[#allocation9 + $0x8] sm:$0xff] }
 0x1f3   : > { %v2775_v52 = vpop.eup %2774  ;;  %1058 = vperm.xlu0 %2768, %v2773_v48   ;;  %2379 = vmatprep.subr.mxu0 %v1337_v9  ;;  %2800 = vrcp.f32 %v1006_v21  ;;  %v2081_v0 = vld [vmem:[#allocation3] sm:$0xff]  }
 0x1f4   : > { %v2777_v55 = vpop.eup %2776  ;;  %2461 = vmatprep.subr.mxu1 %v1320_v15  ;;  %2380 = vmatpush3.msra.mxu0 %v1337_v9  ;;  %2802 = vrcp.f32 %v1009_v36  ;;  %v1329_v9 = vld [vmem:[#allocation10 + $0x8] sm:$0xff]  ;;  %v1312_v21 = vld [vmem:[#allocation9] sm:$0xff] }
 0x1f5   : > { %v2779_v61 = vpop.eup %2778  ;;  %2462 = vmatpush3.msra.mxu1 %v1320_v15  ;;  %2381 = vmatprep.subr.mxu0 %v1336_v32  ;;  %2804 = vrcp.f32 %v1008_v46  ;;  %v1016_v15 = vadd.f32 1.0, %v3655_v60  ;;  %v2144_v36 = vld [vmem:[#allocation3 + $0x8] sm:$0xff]   ;;  %v1328_v46 = vld [vmem:[#allocation10] sm:$0xff] }
 0x1f6   : > { %1073 = vperm.xlu1 %2769, %v2775_v52   ;;  %v2781_v4 = vpop.eup %2780  ;;  %2463 = vmatprep.subr.mxu1 %v1319_v34  ;;  %2806 = vrcp.f32 %v1011_v17  ;;  %v1015_v52 = vadd.f32 1.0, %v3647_v47  ;;  %v2086_v17 = vunpack.c.l.bf16 %v2144_v36 }
 0x1f7   : > { %1063 = vperm.xlu0 %2768, %v2777_v55   ;;  %v2783_v20 = vpop.eup %2782  ;;  %2382 = vmatpush3.msra.mxu0 %v1336_v32  ;;  %2808 = vrcp.f32 %v1010_v24  ;;  %v3661_v32 = vld [vmem:[#allocation2 + $0x10] sm:$0xff]  ;;  %v3667_v24 = vld [vmem:[#allocation2 + $0xa0] sm:$0xff] }
 0x1f8   : > { %v2785_v29 = vpop.eup %2784  ;;  %2464 = vmatpush3.msra.mxu1 %v1319_v34  ;;  %2383 = vmatprep.subr.mxu0 %v1335_v40  ;;  %2810 = vrcp.f32 %v1013_v38  ;;  %v2082_v34 = vunpack.c.l.bf16 %v2081_v0 }
 0x1f9   : > { %v2787_v43 = vpop.eup %2786  ;;  %2465 = vmatprep.subr.mxu1 %v1318_v6  ;;  %2384 = vmatpush3.msra.mxu0 %v1335_v40  ;;  %2812 = vrcp.f32 %v1012_v44  ;;  %v2083_v40 = vunpack.c.h.bf16 %v2081_v0  ;;  %v2146_v44 = vld [vmem:[#allocation3 + $0x18] sm:$0xff]  }
 0x1fa   : > { %1083 = vperm.xlu1 %2769, %v2779_v61   ;;  %v2789_v7 = vpop.eup %2788  ;;  %2466 = vmatpush3.msra.mxu1 %v1318_v6  ;;  %v1330_v61 = vld [vmem:[#allocation10 + $0x10] sm:$0xff]  ;;  %2814 = vrcp.f32 %v1015_v52 }
 0x1fb   : > { %1078 = vperm.xlu0 %2768, %v2781_v4   ;;  %v2791_v23 = vpop.eup %2790  ;;  %2385 = vmatprep.subr.mxu0 %v1334_v12  ;;  %v1017_v4 = vadd.f32 1.0, %v3653_v58  ;;  %2816 = vrcp.f32 %v1014_v57 }
 0x1fc   : > { %v2793_v30 = vpop.eup %2792  ;;  %2467 = vmatprep.subr.mxu1 %v1317_v18  ;;  %2386 = vmatpush3.msra.mxu0 %v1334_v12  ;;  %v3665_v12 = vld [vmem:[#allocation2 + $0xf8] sm:$0xff] }
 0x1fd   : > { %2468 = vmatpush3.msra.mxu1 %v1317_v18  ;;  %v2795_v41 = vpop.eup %2794  ;;  %2387 = vmatprep.subr.mxu0 %v1333_v35  ;;  %2818 = vrcp.f32 %v1017_v4  ;;  %v2145_v18 = vld [vmem:[#allocation3 + $0x10] sm:$0xff]  }
 0x1fe   : > { %1093 = vperm.xlu1 %2769, %v2783_v20   ;;  %v2797_v48 = vpop.eup %2796  ;;  %2469 = vmatprep.subr.mxu1 %v1316_v37  ;;  %v3659_v20 = vld [vmem:[#allocation2 + $0x28] sm:$0xff]  ;;  %2820 = vrcp.f32 %v1016_v15 }
 0x1ff   : > { %1088 = vperm.xlu0 %2768, %v2785_v29   ;;  %2388 = vmatpush3.msra.mxu0 %v1333_v35  ;;  %v2799_v55 = vpop.eup %2798  ;;  %v1021_v35 = vadd.f32 1.0, %v3665_v12 }
 0x200   : > { %2470 = vmatpush3.msra.mxu1 %v1316_v37  ;;  %2389 = vmatprep.subr.mxu0 %v1332_v39  ;;  %v2801_v59 = vpop.eup %2800  ;;  %v2090_v37 = vunpack.c.l.bf16 %v2145_v18 }
 0x201   : > { %2471 = vmatprep.subr.mxu1 %v1315_v49  ;;  %2390 = vmatpush3.msra.mxu0 %v1332_v39  ;;  %v2803_v14 = vpop.eup %2802  ;;  %v1020_v39 = vadd.f32 1.0, %v3667_v24 }
 0x202   : > { %1103 = vperm.xlu1 %2769, %v2787_v43   ;;  %2472 = vmatpush3.msra.mxu1 %v1315_v49  ;;  %v2805_v29 = vpop.eup %2804  ;;  %v1019_v43 = vadd.f32 1.0, %v3659_v20 }
 0x203   : > { %1098 = vperm.xlu0 %2768, %v2789_v7   ;;  %2391 = vmatprep.subr.mxu0 %v1331_v51  ;;  %v2807_v6 = vpop.eup %2806  ;;  %v1018_v7 = vadd.f32 1.0, %v3661_v32 }
 0x204   : > { %2473 = vmatprep.subr.mxu1 %v1314_v53  ;;  %2392 = vmatpush3.msra.mxu0 %v1331_v51  ;;  %2822 = vrcp.f32 %v1019_v43  ;;  %v2091_v51 = vunpack.c.h.bf16 %v2145_v18 }
 0x205   : > { %2474 = vmatpush3.msra.mxu1 %v1314_v53  ;;  %2393 = vmatprep.subr.mxu0 %v1330_v61  ;;  %2824 = vrcp.f32 %v1018_v7  ;;  %v2094_v53 = vunpack.c.l.bf16 %v2146_v44 }
 0x206   : > { %1113 = vperm.xlu1 %2769, %v2791_v23   ;;  %2475 = vmatprep.subr.mxu1 %v1313_v62  ;;  %v2809_v23 = vpop.eup %2808  ;;  %2826 = vrcp.f32 %v1021_v35 }
 0x207   : > { %1108 = vperm.xlu0 %2768, %v2793_v30   ;;  %2394 = vmatpush3.msra.mxu0 %v1330_v61  ;;  %v2087_v30 = vunpack.c.h.bf16 %v2144_v36  ;;  %v2811_v38 = vpop.eup %2810  ;;  %2828 = vrcp.f32 %v1020_v39  ;;  %v2152_v39 = vld [vmem:[#allocation3 + $0x48] sm:$0xff]  }
 0x208   : > { %2476 = vmatpush3.msra.mxu1 %v1313_v62  ;;  %2395 = vmatprep.subr.mxu0 %v1329_v9  ;;  %v2813_v49 = vpop.eup %2812  ;;  %v2095_v62 = vunpack.c.h.bf16 %v2146_v44 }
 0x209   : > { %2477 = vmatprep.subr.mxu1 %v1312_v21  ;;  %2396 = vmatpush3.msra.mxu0 %v1329_v9  ;;  %v2148_v9 = vld [vmem:[#allocation3 + $0x28] sm:$0xff]  }
 0x20a   : > { %1123 = vperm.xlu1 %2769, %v2795_v41   ;;  %2478 = vmatpush3.msra.mxu1 %v1312_v21  ;;  %v3671_v41 = vld [vmem:[#allocation2 + $0x98] sm:$0xff]  ;;  %v2102_v21 = vunpack.c.l.bf16 %v2148_v9 }
 0x20b   : > { %1118 = vperm.xlu0 %2768, %v2797_v48   ;;  %2479 = vmatprep.mubr.f32.mxu1 %v2082_v34  ;;  %v3673_v48 = vld [vmem:[#allocation2 + $0x20] sm:$0xff]  ;;  %v1023_v52 = vadd.f32 1.0, %v3671_v41  ;;  %v2149_v34 = vld [vmem:[#allocation3 + $0x30] sm:$0xff]  }
 0x20c   : > { %2397 = vmatprep.subr.mxu0 %v1328_v46  ;;  %2480 = vmatmul.mubr.f32.vlgmr.msra.gmra.mxu1 %v2083_v40  ;;  %v1022_v57 = vadd.f32 1.0, %v3673_v48  ;;  %v2103_v40 = vunpack.c.h.bf16 %v2148_v9  ;;  %v2106_v43 = vunpack.c.l.bf16 %v2149_v34 }
 0x20d   : > { %2398 = vmatpush3.msra.mxu0 %v1328_v46  ;;  %2482 = vmatprep.mubr.f32.mxu1 %v2086_v17  ;;  %2830 = vrcp.f32 %v1023_v52  ;;  %v2107_v17 = vunpack.c.h.bf16 %v2149_v34  ;;  %v2119_v52 = vunpack.c.h.bf16 %v2152_v39  ;;  %v2158_v34 = vld [vmem:[#allocation3 + $0x78] sm:$0xff]  }
 0x20e   : > { %1133 = vperm.xlu1 %2769, %v2799_v55   ;;  %v2815_v55 = vpop.eup %2814  ;;  %2832 = vrcp.f32 %v1022_v57 }
 0x20f   : > { %1128 = vperm.xlu0 %2768, %v2801_v59   ;;  %v2147_v59 = vld [vmem:[#allocation3 + $0x20] sm:$0xff]   ;;  %v2817_v61 = vpop.eup %2816 }
 0x210   : > { %2483 = vmatmul.mubr.f32.gmra.mxu1 %v2087_v30  ;;  %v2098_v0 = vunpack.c.l.bf16 %v2147_v59  ;;  %v2819_v4 = vpop.eup %2818  ;;  %v2099_v15 = vunpack.c.h.bf16 %v2147_v59  ;;  %v2151_v30 = vld [vmem:[#allocation3 + $0x40] sm:$0xff]  }
 0x211   : > { %2485 = vmatprep.mubr.f32.mxu1 %v2090_v37  ;;  %v2115_v44 = vunpack.c.h.bf16 %v2151_v30 }
 0x212   : > { %1143 = vperm.xlu1 %2769, %v2803_v14   ;;  %v2821_v14 = vpop.eup %2820 }
 0x213   : > { %1138 = vperm.xlu0 %2768, %v2805_v29   ;;  %v2823_v29 = vpop.eup %2822 }
 0x214   : > { %2486 = vmatmul.mubr.f32.gmra.mxu1 %v2091_v51  ;;  %v2825_v36 = vpop.eup %2824  ;;  %v2153_v51 = vld [vmem:[#allocation3 + $0x50] sm:$0xff]  }
 0x215   : > { %2488 = vmatprep.mubr.f32.mxu1 %v2094_v53  ;;  %v2827_v46 = vpop.eup %2826  ;;  %v2122_v53 = vunpack.c.l.bf16 %v2153_v51  ;;  %v2123_v57 = vunpack.c.h.bf16 %v2153_v51 }
 0x216   : > { %1153 = vperm.xlu1 %2769, %v2807_v6   ;;  %v2150_v6 = vld [vmem:[#allocation3 + $0x38] sm:$0xff]   ;;  %v2829_v7 = vpop.eup %2828 }
 0x217   : > { %1148 = vperm.xlu0 %2768, %v2809_v23   ;;  %v2110_v18 = vunpack.c.l.bf16 %v2150_v6  ;;  %v2111_v37 = vunpack.c.h.bf16 %v2150_v6 }
 0x218   : > { %2489 = vmatmul.mubr.f32.gmra.mxu1 %v2095_v62 }
 0x219   : > { %2491 = vmatprep.mubr.f32.mxu1 %v2098_v0 }
 0x21a   : > { %1163 = vperm.xlu1 %2769, %v2811_v38   ;;  %v2831_v23 = vpop.eup %2830  ;;  %v2114_v38 = vunpack.c.l.bf16 %v2151_v30 }
 0x21b   : > { %1158 = vperm.xlu0 %2768, %v2813_v49   ;;  %v2833_v35 = vpop.eup %2832  ;;  %v2118_v49 = vunpack.c.l.bf16 %v2152_v39 }
 0x21c   : > { %2492 = vmatmul.mubr.f32.gmra.mxu1 %v2099_v15  ;;  %v2157_v15 = vld [vmem:[#allocation3 + $0x70] sm:$0xff]  }
 0x21d   : > { %2494 = vmatprep.mubr.f32.mxu1 %v2102_v21 }
 0x21e   : > { %1173 = vperm.xlu1 %2769, %v2815_v55   ;;  %v2154_v55 = vld [vmem:[#allocation3 + $0x58] sm:$0xff]  }
 0x21f   : > { %1168 = vperm.xlu0 %2768, %v2817_v61   ;;  %v2126_v59 = vunpack.c.l.bf16 %v2154_v55  ;;  %v2155_v61 = vld [vmem:[#allocation3 + $0x60] sm:$0xff]   ;;  %v2127_v62 = vunpack.c.h.bf16 %v2154_v55 }
 0x220   : > { %2495 = vmatmul.mubr.f32.gmra.mxu1 %v2103_v40  ;;  %v2130_v0 = vunpack.c.l.bf16 %v2155_v61  ;;  %v2131_v9 = vunpack.c.h.bf16 %v2155_v61  ;;  %v2142_v40 = vunpack.c.l.bf16 %v2158_v34 }
 0x221   : > { %2497 = vmatprep.mubr.f32.mxu1 %v2106_v43  ;;  %v2143_v43 = vunpack.c.h.bf16 %v2158_v34 }
 0x222   : > { %1183 = vperm.xlu1 %2769, %v2819_v4   ;;  %v2156_v4 = vld [vmem:[#allocation3 + $0x68] sm:$0xff]  }
 0x223   : > { %1178 = vperm.xlu0 %2768, %v2821_v14   ;;  %v2134_v14 = vunpack.c.l.bf16 %v2156_v4  ;;  %v2135_v21 = vunpack.c.h.bf16 %v2156_v4 }
 0x224   : > { %2498 = vmatmul.mubr.f32.gmra.mxu1 %v2107_v17 }
 0x225   : > { %2500 = vmatprep.mubr.f32.mxu1 %v2110_v18 }
 0x226   : > { %1193 = vperm.xlu1 %2769, %v2823_v29   ;;  %v2138_v29 = vunpack.c.l.bf16 %v2157_v15 }
 0x227   : > { %1188 = vperm.xlu0 %2768, %v2825_v36   ;;  %v2139_v36 = vunpack.c.h.bf16 %v2157_v15 }
 0x228   : > { %2501 = vmatmul.mubr.f32.gmra.mxu1 %v2111_v37 }
 0x229   : > { %2503 = vmatprep.mubr.f32.mxu1 %v2114_v38 }
 0x22a   : > { %1203 = vperm.xlu1 %2769, %v2827_v46  }
 0x22b   : > { %1198 = vperm.xlu0 %2768, %v2829_v7  }
 0x22c   : > { %2504 = vmatmul.mubr.f32.gmra.mxu1 %v2115_v44 }
 0x22d   : > { %2506 = vmatprep.mubr.f32.mxu1 %v2118_v49 }
 0x22e   : > { %1213 = vperm.xlu1 %2769, %v2831_v23  }
 0x22f   : > { %1208 = vperm.xlu0 %2768, %v2833_v35  }
 0x230   : > { %2507 = vmatmul.mubr.f32.gmra.mxu1 %v2119_v52 }
 0x231   : > { %2509 = vmatprep.mubr.f32.mxu1 %v2122_v53 }
 0x234   : > { %2510 = vmatmul.mubr.f32.gmra.mxu1 %v2123_v57 }
 0x235   : > { %2512 = vmatprep.mubr.f32.mxu1 %v2126_v59 }
 0x238   : > { %2513 = vmatmul.mubr.f32.gmra.mxu1 %v2127_v62 }
 0x239   : > { %2515 = vmatprep.mubr.f32.mxu1 %v2130_v0 }
 0x23c   : > { %2516 = vmatmul.mubr.f32.gmra.mxu1 %v2131_v9 }
 0x23d   : > { %2518 = vmatprep.mubr.f32.mxu1 %v2134_v14 }
 0x240   : > { %2519 = vmatmul.mubr.f32.gmra.mxu1 %v2135_v21 }
 0x241   : > { %2521 = vmatprep.mubr.f32.mxu1 %v2138_v29 }
 0x244   : > { %2522 = vmatmul.mubr.f32.gmra.mxu1 %v2139_v36 }
 0x245   : > { %2524 = vmatprep.mubr.f32.mxu1 %v2142_v40 }
 0x248   : > { %2525 = vmatmul.mubr.f32.gmra.mxu1 %v2143_v43 }
 0x26d   : > { %v1069_v46 = vpop.permute.xlu1 %1068 }
 0x26e   : > { %v1059_v6 = vpop.permute.xlu0 %1058  ;;  %v1218_v18 = vmul.f32 %v1069_v46, %v3581_v3 }
 0x26f   : > { %v1216_v7 = vmul.f32 %v1059_v6, %v3583_v5 }
 0x271   : > { %2399 = vmatprep.mubr.f32.mxu0 %v1216_v7  ;;  %v1074_v17 = vpop.permute.xlu1 %1073 }
 0x272   : > { %v1064_v23 = vpop.permute.xlu0 %1063  ;;  %v1219_v38 = vmul.f32 %v1074_v17, %v3585_v10 }
 0x273   : > { %v1217_v30 = vmul.f32 %v1064_v23, %v3590_v2 }
 0x275   : > { %2400 = vmatmul.mubr.f32.vlgmr.msra.gmra.mxu0 %v1217_v30  ;;  %v1084_v35 = vpop.permute.xlu1 %1083 }
 0x276   : > { %2402 = vmatprep.mubr.f32.mxu0 %v1218_v18  ;;  %v1079_v37 = vpop.permute.xlu0 %1078  ;;  %v1221_v5 = vmul.f32 %v1084_v35, %v3593_v13 }
 0x277   : > { %v1220_v39 = vmul.f32 %v1079_v37, %v3595_v16 }
 0x279   : > { %2403 = vmatmul.mubr.f32.gmra.mxu0 %v1219_v38  ;;  %v1094_v44 = vpop.permute.xlu1 %1093 }
 0x27a   : > { %2405 = vmatprep.mubr.f32.mxu0 %v1220_v39  ;;  %v1089_v49 = vpop.permute.xlu0 %1088  ;;  %v1223_v52 = vmul.f32 %v1094_v44, %v3599_v19 }
 0x27b   : > { %v1222_v51 = vmul.f32 %v1089_v49, %v3601_v22 }
 0x27d   : > { %2406 = vmatmul.mubr.f32.gmra.mxu0 %v1221_v5  ;;  %v1104_v3 = vpop.permute.xlu1 %1103 }
 0x27e   : > { %2408 = vmatprep.mubr.f32.mxu0 %v1222_v51  ;;  %v1099_v2 = vpop.permute.xlu0 %1098  ;;  %v1225_v55 = vmul.f32 %v1104_v3, %v3605_v25 }
 0x27f   : > { %v1224_v53 = vmul.f32 %v1099_v2, %v3607_v26 }
 0x281   : > { %2409 = vmatmul.mubr.f32.gmra.mxu0 %v1223_v52  ;;  %v1114_v10 = vpop.permute.xlu1 %1113 }
 0x282   : > { %2411 = vmatprep.mubr.f32.mxu0 %v1224_v53  ;;  %v1109_v16 = vpop.permute.xlu0 %1108  ;;  %v1227_v59 = vmul.f32 %v1114_v10, %v3611_v42 }
 0x283   : > { %v1226_v57 = vmul.f32 %v1109_v16, %v3613_v45 }
 0x285   : > { %2412 = vmatmul.mubr.f32.gmra.mxu0 %v1225_v55  ;;  %v1124_v13 = vpop.permute.xlu1 %1123 }
 0x286   : > { %2414 = vmatprep.mubr.f32.mxu0 %v1226_v57  ;;  %v1119_v22 = vpop.permute.xlu0 %1118  ;;  %v1229_v62 = vmul.f32 %v1124_v13, %v3617_v54 }
 0x287   : > { %v1228_v61 = vmul.f32 %v1119_v22, %v3619_v56 }
 0x289   : > { %2415 = vmatmul.mubr.f32.gmra.mxu0 %v1227_v59  ;;  %v1134_v19 = vpop.permute.xlu1 %1133 }
 0x28a   : > { %2417 = vmatprep.mubr.f32.mxu0 %v1228_v61  ;;  %v1129_v26 = vpop.permute.xlu0 %1128  ;;  %v1231_v4 = vmul.f32 %v1134_v19, %v3623_v63 }
 0x28b   : > { %v1230_v0 = vmul.f32 %v1129_v26, %v3625_v8 }
 0x28d   : > { %2418 = vmatmul.mubr.f32.gmra.mxu0 %v1229_v62  ;;  %v1144_v25 = vpop.permute.xlu1 %1143 }
 0x28e   : > { %2420 = vmatprep.mubr.f32.mxu0 %v1230_v0  ;;  %v1139_v45 = vpop.permute.xlu0 %1138  ;;  %v1233_v14 = vmul.f32 %v1144_v25, %v3629_v28 }
 0x28f   : > { %v1232_v9 = vmul.f32 %v1139_v45, %v3631_v31 }
 0x291   : > { %2421 = vmatmul.mubr.f32.gmra.mxu0 %v1231_v4  ;;  %v1154_v42 = vpop.permute.xlu1 %1153 }
 0x292   : > { %2423 = vmatprep.mubr.f32.mxu0 %v1232_v9  ;;  %v1149_v56 = vpop.permute.xlu0 %1148  ;;  %v1235_v21 = vmul.f32 %v1154_v42, %v3635_v11 }
 0x293   : > { %v1234_v15 = vmul.f32 %v1149_v56, %v3637_v1 }
 0x295   : > { %2424 = vmatmul.mubr.f32.gmra.mxu0 %v1233_v14  ;;  %v1164_v54 = vpop.permute.xlu1 %1163 }
 0x296   : > { %2426 = vmatprep.mubr.f32.mxu0 %v1234_v15  ;;  %v1159_v8 = vpop.permute.xlu0 %1158  ;;  %v1237_v34 = vmul.f32 %v1164_v54, %v3641_v27 }
 0x297   : > { %v1236_v29 = vmul.f32 %v1159_v8, %v3643_v33 }
 0x299   : > { %2427 = vmatmul.mubr.f32.gmra.mxu0 %v1235_v21  ;;  %v1174_v63 = vpop.permute.xlu1 %1173 }
 0x29a   : > { %2429 = vmatprep.mubr.f32.mxu0 %v1236_v29  ;;  %v1169_v31 = vpop.permute.xlu0 %1168  ;;  %v1239_v40 = vmul.f32 %v1174_v63, %v3647_v47 }
 0x29b   : > { %v1238_v36 = vmul.f32 %v1169_v31, %v3649_v50 }
 0x29d   : > { %2430 = vmatmul.mubr.f32.gmra.mxu0 %v1237_v34  ;;  %v1184_v28 = vpop.permute.xlu1 %1183 }
 0x29e   : > { %2432 = vmatprep.mubr.f32.mxu0 %v1238_v36  ;;  %v1179_v1 = vpop.permute.xlu0 %1178  ;;  %v1241_v46 = vmul.f32 %v1184_v28, %v3653_v58 }
 0x29f   : > { %v1240_v43 = vmul.f32 %v1179_v1, %v3655_v60 }
 0x2a1   : > { %2433 = vmatmul.mubr.f32.gmra.mxu0 %v1239_v40  ;;  %v1194_v11 = vpop.permute.xlu1 %1193 }
 0x2a2   : > { %2435 = vmatprep.mubr.f32.mxu0 %v1240_v43  ;;  %v1189_v33 = vpop.permute.xlu0 %1188  ;;  %v1243_v7 = vmul.f32 %v1194_v11, %v3659_v20 }
 0x2a3   : > { %v1242_v6 = vmul.f32 %v1189_v33, %v3661_v32 }
 0x2a5   : > { %2436 = vmatmul.mubr.f32.gmra.mxu0 %v1241_v46  ;;  %v1204_v27 = vpop.permute.xlu1 %1203 }
 0x2a6   : > { %2438 = vmatprep.mubr.f32.mxu0 %v1242_v6  ;;  %v1199_v50 = vpop.permute.xlu0 %1198  ;;  %v1245_v60 = vmul.f32 %v1204_v27, %v3665_v12 }
 0x2a7   : > { %v1244_v17 = vmul.f32 %v1199_v50, %v3667_v24 }
 0x2a9   : > { %2439 = vmatmul.mubr.f32.gmra.mxu0 %v1243_v7  ;;  %v1214_v23 = vpop.permute.xlu1 %1213 }
 0x2aa   : > { %2441 = vmatprep.mubr.f32.mxu0 %v1244_v17  ;;  %v1209_v47 = vpop.permute.xlu0 %1208  ;;  %v1247_v58 = vmul.f32 %v1214_v23, %v3671_v41 }
 0x2ab   : > { %v1246_v18 = vmul.f32 %v1209_v47, %v3673_v48 }
 0x2ad   : > { %2442 = vmatmul.mubr.f32.gmra.mxu0 %v1245_v60 }
 0x2ae   : > { %2444 = vmatprep.mubr.f32.mxu0 %v1246_v18 }
 0x2b1   : > { %2445 = vmatmul.mubr.f32.gmra.mxu0 %v1247_v58 }
 0x2cc   : > { %v2481_v32 = vpop.f32.mrf.mxu1 }
 0x2ce   : > { %v1635_v30 = vpop.f32.mrf.mxu1 }
 0x2d0   : > { %v2484_v35 = vpop.f32.mrf.mxu1 }
 0x2d2   : > { %v1645_v37 = vpop.f32.mrf.mxu1 }
 0x2d4   : > { %v2487_v20 = vpop.f32.mrf.mxu1 }
 0x2d6   : > { %v1655_v38 = vpop.f32.mrf.mxu1 }
 0x2d8   : > { %v2490_v24 = vpop.f32.mrf.mxu1 }
 0x2da   : > { %v1665_v39 = vpop.f32.mrf.mxu1 }
 0x2dc   : > { %v2493_v44 = vpop.f32.mrf.mxu1 }
 0x2de   : > { %v1675_v49 = vpop.f32.mrf.mxu1 }
 0x2e0   : > { %v2496_v12 = vpop.f32.mrf.mxu1 }
 0x2e2   : > { %v1685_v5 = vpop.f32.mrf.mxu1 }
 0x2e4   : > { %v2499_v48 = vpop.f32.mrf.mxu1 }
 0x2e6   : > { %v1695_v51 = vpop.f32.mrf.mxu1 }
 0x2e8   : > { %v3709_v3 = vpop.f32.mrf.mxu1 }
 0x2ea   : > { %v3711_v41 = vpop.f32.mrf.mxu1 }
 0x2ec   : > { %v3713_v10 = vpop.f32.mrf.mxu1 }
 0x2ee   : > { %v3716_v61 = vpop.f32.mrf.mxu1 }
 0x2f0   : > { %v2508_v4 = vpop.f32.mrf.mxu1 }
 0x2f2   : > { %v1725_v8 = vpop.f32.mrf.mxu1 }
 0x2f4   : > { %v2511_v28 = vpop.f32.mrf.mxu1 }
 0x2f6   : > { %v1735_v6 = vpop.f32.mrf.mxu1 }
 0x2f8   : > { %v2514_v18 = vpop.f32.mrf.mxu1 }
 0x335   : > { %v2401_v2 = vpop.f32.mrf.mxu0 }
 0x336   : > { %v1641_v52 = vadd.f32 %v2481_v32, %v2401_v2 }
 0x337   : > { %v1410_v53 = vpop.f32.mrf.mxu0 }
 0x338   : > { %v1795_v16 = vmax.f32 %v1641_v52, 0.0  ;;  %v1636_v55 = vadd.f32 %v1635_v30, %v1410_v53 }
 0x339   : > { %v2404_v57 = vpop.f32.mrf.mxu0 }
 0x33a   : > { %1827 = vst [vmem:[%s3383_s16 + $0x8] sm:$0xff] %v1795_v16  ;;  %v1794_v13 = vmax.f32 %v1636_v55, 0.0  ;;  %v1651_v22 = vadd.f32 %v2484_v35, %v2404_v57 }
 0x33b   : > { %v1420_v59 = vpop.f32.mrf.mxu0 }
 0x33c   : > { %1826 = vst [vmem:[%s3383_s16] sm:$0xff] %v1794_v13  ;;  %v1797_v19 = vmax.f32 %v1651_v22, 0.0  ;;  %v1646_v26 = vadd.f32 %v1645_v37, %v1420_v59 }
 0x33d   : > { %v2407_v62 = vpop.f32.mrf.mxu0 }
 0x33e   : > { %1829 = vst [vmem:[%s3383_s16 + $0x18] sm:$0xff] %v1797_v19  ;;  %v1796_v0 = vmax.f32 %v1646_v26, 0.0  ;;  %v1661_v25 = vadd.f32 %v2487_v20, %v2407_v62  ;;  %v1745_v20 = vpop.f32.mrf.mxu1 }
 0x33f   : > { %v1430_v45 = vpop.f32.mrf.mxu0 }
 0x340   : > { %1828 = vst [vmem:[%s3383_s16 + $0x10] sm:$0xff] %v1796_v0  ;;  %v1799_v9 = vmax.f32 %v1661_v25, 0.0  ;;  %v1656_v42 = vadd.f32 %v1655_v38, %v1430_v45 }
 0x341   : > { %v2410_v56 = vpop.f32.mrf.mxu0 }
 0x342   : > { %1831 = vst [vmem:[%s3383_s16 + $0x28] sm:$0xff] %v1799_v9  ;;  %v1798_v14 = vmax.f32 %v1656_v42, 0.0  ;;  %v1671_v15 = vadd.f32 %v2490_v24, %v2410_v56 }
 0x343   : > { %v1440_v54 = vpop.f32.mrf.mxu0 }
 0x344   : > { %1830 = vst [vmem:[%s3383_s16 + $0x20] sm:$0xff] %v1798_v14  ;;  %v1801_v21 = vmax.f32 %v1671_v15, 0.0  ;;  %v1666_v29 = vadd.f32 %v1665_v39, %v1440_v54 }
 0x345   : > { %v2413_v63 = vpop.f32.mrf.mxu0 }
 0x346   : > { %1833 = vst [vmem:[%s3383_s16 + $0x38] sm:$0xff] %v1801_v21  ;;  %v1800_v31 = vmax.f32 %v1666_v29, 0.0  ;;  %v1681_v34 = vadd.f32 %v2493_v44, %v2413_v63 }
 0x347   : > { %v1450_v36 = vpop.f32.mrf.mxu0 }
 0x348   : > { %1832 = vst [vmem:[%s3383_s16 + $0x30] sm:$0xff] %v1800_v31  ;;  %v1803_v1 = vmax.f32 %v1681_v34, 0.0  ;;  %v1676_v40 = vadd.f32 %v1675_v49, %v1450_v36 }
 0x349   : > { %v2416_v43 = vpop.f32.mrf.mxu0 }
 0x34a   : > { %1835 = vst [vmem:[%s3383_s16 + $0x48] sm:$0xff] %v1803_v1  ;;  %v1802_v11 = vmax.f32 %v1676_v40, 0.0  ;;  %v1691_v33 = vadd.f32 %v2496_v12, %v2416_v43 }
 0x34b   : > { %v1460_v46 = vpop.f32.mrf.mxu0 }
 0x34c   : > { %1834 = vst [vmem:[%s3383_s16 + $0x40] sm:$0xff] %v1802_v11  ;;  %v1805_v27 = vmax.f32 %v1691_v33, 0.0  ;;  %v1686_v50 = vadd.f32 %v1685_v5, %v1460_v46  ;;  %v2517_v5 = vpop.f32.mrf.mxu1 }
 0x34d   : > { %v2419_v7 = vpop.f32.mrf.mxu0 }
 0x34e   : > { %1837 = vst [vmem:[%s3383_s16 + $0x58] sm:$0xff] %v1805_v27  ;;  %v1804_v17 = vmax.f32 %v1686_v50, 0.0  ;;  %v1701_v47 = vadd.f32 %v2499_v48, %v2419_v7  ;;  %v1755_v53 = vpop.f32.mrf.mxu1 }
 0x34f   : > { %v1470_v60 = vpop.f32.mrf.mxu0 }
 0x350   : > { %1836 = vst [vmem:[%s3383_s16 + $0x50] sm:$0xff] %v1804_v17  ;;  %v1807_v23 = vmax.f32 %v1701_v47, 0.0  ;;  %v1696_v58 = vadd.f32 %v1695_v51, %v1470_v60  ;;  %v2520_v59 = vpop.f32.mrf.mxu1 }
 0x351   : > { %v2422_v32 = vpop.f32.mrf.mxu0 }
 0x352   : > { %1839 = vst [vmem:[%s3383_s16 + $0x68] sm:$0xff] %v1807_v23  ;;  %v1806_v30 = vmax.f32 %v1696_v58, 0.0  ;;  %v1711_v35 = vadd.f32 %v3709_v3, %v2422_v32  ;;  %v1765_v45 = vpop.f32.mrf.mxu1 }
 0x353   : > { %v1480_v37 = vpop.f32.mrf.mxu0 }
 0x354   : > { %1838 = vst [vmem:[%s3383_s16 + $0x60] sm:$0xff] %v1806_v30  ;;  %v1809_v38 = vmax.f32 %v1711_v35, 0.0  ;;  %v1706_v24 = vadd.f32 %v3711_v41, %v1480_v37  ;;  %v2523_v54 = vpop.f32.mrf.mxu1 }
 0x355   : > { %v2425_v39 = vpop.f32.mrf.mxu0 }
 0x356   : > { %1841 = vst [vmem:[%s3383_s16 + $0x78] sm:$0xff] %v1809_v38  ;;  %v1808_v44 = vmax.f32 %v1706_v24, 0.0  ;;  %v1721_v49 = vadd.f32 %v3713_v10, %v2425_v39  ;;  %v1775_v36 = vpop.f32.mrf.mxu1 }
 0x357   : > { %v1490_v12 = vpop.f32.mrf.mxu0 }
 0x358   : > { %1840 = vst [vmem:[%s3383_s16 + $0x70] sm:$0xff] %v1808_v44  ;;  %v1811_v48 = vmax.f32 %v1721_v49, 0.0  ;;  %v1716_v51 = vadd.f32 %v3716_v61, %v1490_v12  ;;  %v2526_v46 = vpop.f32.mrf.mxu1 }
 0x359   : > { %v2428_v3 = vpop.f32.mrf.mxu0 }
 0x35a   : > { %1843 = vst [vmem:[%s3383_s16 + $0x88] sm:$0xff] %v1811_v48  ;;  %v1810_v2 = vmax.f32 %v1716_v51, 0.0  ;;  %v1731_v52 = vadd.f32 %v2508_v4, %v2428_v3  ;;  %v1785_v47 = vpop.f32.mrf.mxu1 }
 0x35b   : > { %v1500_v41 = vpop.f32.mrf.mxu0 }
 0x35c   : > { %1842 = vst [vmem:[%s3383_s16 + $0x80] sm:$0xff] %v1810_v2  ;;  %v1813_v16 = vmax.f32 %v1731_v52, 0.0  ;;  %v1726_v55 = vadd.f32 %v1725_v8, %v1500_v41 }
 0x35d   : > { %v2431_v10 = vpop.f32.mrf.mxu0 }
 0x35e   : > { %1845 = vst [vmem:[%s3383_s16 + $0x98] sm:$0xff] %v1813_v16  ;;  %v1812_v57 = vmax.f32 %v1726_v55, 0.0  ;;  %v1741_v13 = vadd.f32 %v2511_v28, %v2431_v10 }
 0x35f   : > { %v1510_v22 = vpop.f32.mrf.mxu0 }
 0x360   : > { %1844 = vst [vmem:[%s3383_s16 + $0x90] sm:$0xff] %v1812_v57  ;;  %v1815_v61 = vmax.f32 %v1741_v13, 0.0  ;;  %v1736_v19 = vadd.f32 %v1735_v6, %v1510_v22 }
 0x361   : > { %v2434_v26 = vpop.f32.mrf.mxu0 }
 0x362   : > { %1847 = vst [vmem:[%s3383_s16 + $0xa8] sm:$0xff] %v1815_v61  ;;  %v1814_v62 = vmax.f32 %v1736_v19, 0.0  ;;  %v1751_v0 = vadd.f32 %v2514_v18, %v2434_v26 }
 0x363   : > { %v1520_v25 = vpop.f32.mrf.mxu0 }
 0x364   : > { %1846 = vst [vmem:[%s3383_s16 + $0xa0] sm:$0xff] %v1814_v62  ;;  %v1817_v4 = vmax.f32 %v1751_v0, 0.0  ;;  %v1746_v9 = vadd.f32 %v1745_v20, %v1520_v25 }
 0x365   : > { %v2437_v42 = vpop.f32.mrf.mxu0 }
 0x366   : > { %1849 = vst [vmem:[%s3383_s16 + $0xb8] sm:$0xff] %v1817_v4  ;;  %v1816_v56 = vmax.f32 %v1746_v9, 0.0  ;;  %v1761_v14 = vadd.f32 %v2517_v5, %v2437_v42 }
 0x367   : > { %v1530_v15 = vpop.f32.mrf.mxu0 }
 0x368   : > { %1848 = vst [vmem:[%s3383_s16 + $0xb0] sm:$0xff] %v1816_v56  ;;  %v1819_v8 = vmax.f32 %v1761_v14, 0.0  ;;  %v1756_v21 = vadd.f32 %v1755_v53, %v1530_v15 }
 0x369   : > { %v2440_v29 = vpop.f32.mrf.mxu0 }
 0x36a   : > { %1851 = vst [vmem:[%s3383_s16 + $0xc8] sm:$0xff] %v1819_v8  ;;  %v1818_v63 = vmax.f32 %v1756_v21, 0.0  ;;  %v1771_v31 = vadd.f32 %v2520_v59, %v2440_v29 }
 0x36b   : > { %v1540_v34 = vpop.f32.mrf.mxu0 }
 0x36c   : > { %1850 = vst [vmem:[%s3383_s16 + $0xc0] sm:$0xff] %v1818_v63  ;;  %v1821_v28 = vmax.f32 %v1771_v31, 0.0  ;;  %v1766_v1 = vadd.f32 %v1765_v45, %v1540_v34 }
 0x36d   : > { %v2443_v40 = vpop.f32.mrf.mxu0 }
 0x36e   : > { %1853 = vst [vmem:[%s3383_s16 + $0xd8] sm:$0xff] %v1821_v28  ;;  %v1820_v43 = vmax.f32 %v1766_v1, 0.0  ;;  %v1781_v11 = vadd.f32 %v2523_v54, %v2443_v40 }
 0x36f   : > { %v1550_v33 = vpop.f32.mrf.mxu0 }
 0x370   : > { %1852 = vst [vmem:[%s3383_s16 + $0xd0] sm:$0xff] %v1820_v43  ;;  %v1823_v6 = vmax.f32 %v1781_v11, 0.0  ;;  %v1776_v27 = vadd.f32 %v1775_v36, %v1550_v33 }
 0x371   : > { %v2446_v50 = vpop.f32.mrf.mxu0 }
 0x372   : > { %1855 = vst [vmem:[%s3383_s16 + $0xe8] sm:$0xff] %v1823_v6  ;;  %v1822_v7 = vmax.f32 %v1776_v27, 0.0  ;;  %v1791_v17 = vadd.f32 %v2526_v46, %v2446_v50 }
 0x373   : > { %v1560_v60 = vpop.f32.mrf.mxu0 }
 0x374   : > { %1854 = vst [vmem:[%s3383_s16 + $0xe0] sm:$0xff] %v1822_v7  ;;  %v1825_v18 = vmax.f32 %v1791_v17, 0.0  ;;  %v1786_v23 = vadd.f32 %v1785_v47, %v1560_v60 }
 0x376   : > { %1857 = vst [vmem:[%s3383_s16 + $0xf8] sm:$0xff] %v1825_v18  ;;  %v1824_v58 = vmax.f32 %v1786_v23, 0.0 }
 0x378   : > { %1856 = vst [vmem:[%s3383_s16 + $0xf0] sm:$0xff] %v1824_v58 }
 0x379 PF: > { %s3900_s15 = sld [smem:[#allocation22_spill]]  ;;  %s1872_s21 = sshll.u32 %s3383_s16, 4  ;;  %s3760_s21 = int_to_ptr.vmem [resolvable:$true] %s1872_s21 }
 0x37a   : > { %s3902_s24 = sld [smem:[#allocation23_spill]]  ;;  %s3764_s12 = scalar_lea.sflag [#allocation6], %s299_s14 }
 0x37b   : > { %s3903_s4 = sld [smem:[#allocation33_spill]]  ;;  %s2942_s13 = scalar_lea.vmem %s3760_s21, 4096 }
 0x37c   : > { %p2943_p11 = scmp.ne.s32.totalorder %s3760_s21, %s2942_s13  ;;  %s3111_s23 = smov [#allocation12]  }
 0x37d   : > { %s2946_s11 = sshll.u32 %s3111_s23, 4  ;;  %s2947_s11 = int_to_ptr.vmem [resolvable:$false] %s2946_s11 }
 0x37e   : > { %s2948_s10 = scalar_lea.vmem %s2947_s11, 8192  ;;  %p2949_p2 = scmp.lt.s32.totalorder %s3760_s21, %s2947_s11 }
 0x37f   : > { %s2079_s0 = sshll.u32 %s3900_s15, 12  ;;  %p2950_p10 = scmp.lt.s32.totalorder %s2948_s10, %s2942_s13 }
 0x380   : > { %p3904_p12 = scmp.ne.s32.totalorder %s3902_s24, 0 }
 0x381   : > { %s3757_s8 = scalar_lea.hbm %s3903_s4, %s2079_s0  ;;  %p2951_p3 = por %p2950_p10, %p2949_p2 }
 0x382   : > { %p2944_p8 = pnand %p2943_p11, %p3904_p12 }
 0x384   : > { %p2945_p9 = pneg %p2944_p8 }
 0x386   : > { %p2952_p0 = pnand %p2951_p3, %p2945_p9 }
 0x388   : > { %2955 = shalt.err (!%p2952_p0)
}
 0x389   : > { %s2956_s18 = scalar_lea.hbm %s3757_s8, 4096  ;;  %s2960_s25 = scalar_lea.hbm %s3903_s4, 8192 }
 0x38a   : > { %p2957_p7 = scmp.ne.s32.totalorder %s3757_s8, %s2956_s18  ;;  %p2961_p5 = scmp.lt.s32.totalorder %s3757_s8, %s3903_s4 }
 0x38b   : > { %p2962_p6 = scmp.lt.s32.totalorder %s2960_s25, %s2956_s18 }
 0x38c   : > { %p2958_p4 = pnand %p2957_p7, %p3904_p12 }
 0x38d   : > { %p2963_p1 = por %p2962_p6, %p2961_p5 }
 0x38e   : > { %p2959_p13 = pneg %p2958_p4 }
 0x390   : > { %p2964_p11 = pnand %p2963_p1, %p2959_p13 }
 0x392   : > { %2967 = shalt.err (!%p2964_p11)
}
 0x393   : > { %s3112_s29 = smov 128   ;;  %s3113_s30 = smov 8  }
 0x394   : > { %2555 = dma.vmem_to_hbm [thread:$0]  (%p3904_p12), %s3760_s21, 4096, %s3757_s8, %s3764_s12, %s3112_s29, %s3112_s29, %s3113_s30  }
 0x395 PF: > { %s3905_s9 = sld [smem:[#allocation18_spill]]  ;;  %p2580_p8 = scmp.ge.s32.totalorder %s3098_s28, 2 }
 0x396   : > { %s3906_s15 = sld [smem:[#allocation24_spill]] }
 0x39b   : > { %s1887_s2 = sand.u32 1, %s3905_s9  }
 0x39c   : > { %p3907_p9 = scmp.ne.s32.totalorder %s3906_s15, 0  ;;  %s1888_s0 = scalar_lea.sflag [#allocation6], %s1887_s2 }
 0x39e   : > { %p2572_p2 = pnand %p2580_p8, %p3907_p9 }
 0x3a0   : > { %p2573_p10 = pneg %p2572_p2 }
 0x3a2   : > { %3041 = dma.done.wait (%p2573_p10), %s1888_s0, 4096  }
 0x3a3   : > { %3043 = vsyncadd (%p2573_p10), %s1888_s0, 4294963200  ;;  %s24_s28 = sadd.s32 1, %s3098_s28   ;;  %s3909_s15 = sld [smem:[#allocation19_spill]] }
 0x3a4   : > { %p3792_p3 = scmp.ge.s32.totalorder %s24_s28, 6   ;;  %s3910_s24 = sld [smem:[#allocation28_spill]] }
 0x3a5   : > { %s3911_s6 = sld [smem:[#allocation29_spill]]  ;;  %s3916_s16 = smov %s3054_s17 }
 0x3a6   : > { %s3912_s8 = sld [smem:[#allocation20_spill]]  ;;  %s3918_s18 = smov %s3062_s19 }
 0x3a7   : > { %s3913_s23 = sld [smem:[#allocation27_spill]]  ;;  %s3919_s19 = smov %s3066_s20 }
 0x3a8   : > { %s3914_s12 = sld [smem:[#allocation25_spill]]  ;;  %s3921_s21 = smov %s3074_s22 }
 0x3a9   : > { %s3915_s13 = sld [smem:[#allocation26_spill]]  ;;  %s3924_s25 = smov %s3094_s27 }
 0x3aa   : > { %s3917_s17 = smov %s3910_s24  ;;  %s3923_s24 = smov %s3090_s26 }
 0x3ab   : > { %s3920_s20 = smov %s3911_s6  ;;  %23 = sbr.rel (!%p3792_p3) target bundleno = 18 (0x12), region = 114 }
 0x3ac   : > { %s3922_s22 = smov %s3912_s8 }
 0x3ae   : > { %s3925_s26 = smov %s3914_s12 }
 0x3af   : > { %s3926_s27 = smov %s3915_s13 }
 0x3b0   :  { %1893 = vsyncpa [#allocation5], 1 }
 0x3b1   :  { %1895 = vsyncpa [#allocation5 + $0x1], 1 }
 0x3b2   :  { %1896 = vsyncpa [#allocation8], 1 }
 0x3b3   :  { %1898 = vsyncpa [#allocation8 + $0x1], 1 }
 0x3b4   :  { %1899 = vsyncpa [#allocation11], 1 }
 0x3b5   :  { %1900 = vsyncpa [#allocation6], 1 }
 0x3b6   :  { %1902 = vsyncpa [#allocation6 + $0x1], 1 }

</bundles_post_ra>
